<compile_context>
chip_gen: v5e
topology: v5e:2x2
jax: 0.10.0
libtpu: 0.0.40
codegen_flags: <defaults>
</compile_context>

<pallas_src>
import functools
import math

import jax
import jax.numpy as jnp
from jax import lax
from jax.experimental import pallas as pl
from jax.experimental.pallas import tpu as pltpu

_LANE = 128
_SUBLANE = 8


def _round_up(a, b):
    return (a + b - 1) // b * b


# ----------------------------------------------------------------------------
# Pallas kernel
# ----------------------------------------------------------------------------
def mult_kan_kernel(x_ref, grid_ref, recip_ref, wb_ref, wm_ref, ws_ref, o_ref,
                    bases_scr, *, grid_size, spline_order, recip_offsets,
                    compute_dtype, in_pad, chunk_rows):
    """One (token-tile, out-tile) block of MultKANLinear.

    x_ref     : (tile_n, in_pad)          input tokens (f32, lane padded)
    grid_ref  : (G + 2k + 1, in_pad)      spline knots, transposed (f32)
    recip_ref : (R, in_pad)               precomputed 1/(g[j+kk]-g[j]) rows
    wb_ref    : (in_pad, tile_out)        base_weight.T      (compute_dtype)
    wm_ref    : (in_pad, tile_out)        mult_weight.T      (compute_dtype)
    ws_ref    : (C*in_pad, tile_out)      fused spline weights (compute_dtype)
    o_ref     : (tile_n, tile_out)        output tokens
    bases_scr : (tile_n, C*in_pad) VMEM   spline bases slab  (compute_dtype)
    """
    k = spline_order
    G = grid_size
    C = G + k
    n_knots = G + 2 * k + 1
    tile_n = x_ref.shape[0]

    # ---- Cox-de Boor recursion -> bases scratch (once per token tile) ------
    # The out-feature axis is the inner ("arbitrary") grid axis, so the bases
    # for this token tile are built only at j == 0 and reused by later
    # out tiles.
    @pl.when(pl.program_id(1) == 0)
    def _build_bases():
        n_chunks = tile_n // chunk_rows

        def chunk_body(c, carry):
            r0 = pl.multiple_of(c * chunk_rows, chunk_rows)
            xc = x_ref[pl.ds(r0, chunk_rows), :].astype(jnp.float32)

            # Knot differences, hoisted once per chunk, reused at all levels.
            dx = [xc - grid_ref[j:j + 1, :] for j in range(n_knots)]

            # Order-0 bases from incremental comparisons (knots increasing):
            #   bases0[j] = (x >= g[j]) - (x >= g[j+1])
            ge_prev = (xc >= grid_ref[0:1, :]).astype(jnp.float32)
            bases = []
            for j in range(G + 2 * k):
                ge_next = (xc >= grid_ref[j + 1:j + 2, :]).astype(jnp.float32)
                bases.append(ge_prev - ge_next)
                ge_prev = ge_next

            # Recursion with precomputed reciprocals; the shared product
            # rr[off+j] * bases[j] is factored so it is formed exactly once.
            for kk in range(1, k + 1):
                off = recip_offsets[kk - 1]
                t = [recip_ref[off + j:off + j + 1, :] * bases[j]
                     for j in range(len(bases))]
                bases = [dx[j] * t[j] - dx[j + kk + 1] * t[j + 1]
                         for j in range(len(bases) - 1)]
            # -> C = G + k tensors of shape (chunk_rows, in_pad)

            # Store each basis block in compute dtype directly into the slab:
            # no concatenate, half the bytes on the bf16 path.
            for j in range(C):
                bases_scr[pl.ds(r0, chunk_rows),
                          pl.ds(j * in_pad, in_pad)] = bases[j].astype(compute_dtype)
            return carry

        lax.fori_loop(0, n_chunks, chunk_body, 0,
                      unroll=(n_chunks <= 8))

    # ---- MXU phase ---------------------------------------------------------
    x = x_ref[...].astype(jnp.float32)
    silu_x = (x * jax.nn.sigmoid(x)).astype(compute_dtype)   # SiLU (EUP)

    base_out = jnp.dot(silu_x, wb_ref[...], preferred_element_type=jnp.float32)
    mult_raw = jnp.dot(x.astype(compute_dtype), wm_ref[...],
                       preferred_element_type=jnp.float32)
    spline_out = jnp.dot(bases_scr[...], ws_ref[...],
                         preferred_element_type=jnp.float32)
    # TODO(synk): base/spline dots are not fused into one wide matmul because
    # mult_out needs base_out on its own (out = base + spline + (x@wm^T)*base);
    # fusing would require wasted zero weight blocks.

    o_ref[...] = (base_out + spline_out + mult_raw * base_out).astype(o_ref.dtype)


# ----------------------------------------------------------------------------
# Parameter preparation (done ONCE, not per forward call)
# ----------------------------------------------------------------------------
def prepare_mult_kan_params(grid, base_weight, spline_weight, mult_weight,
                            *, grid_size=5, spline_order=3,
                            compute_dtype=jnp.bfloat16, check_grid=True):
    """Lane-pad / transpose / cast weights and precompute knot reciprocals."""
    out_f, in_f = base_weight.shape
    C = grid_size + spline_order
    in_pad = _round_up(in_f, _LANE)
    out_pad = _round_up(out_f, _LANE)

    grid_t = jnp.asarray(grid, jnp.float32).T                 # (n_knots, in_f)
    if check_grid:
        # Repeated knots (possible after KAN grid updates) would make the
        # precomputed reciprocals inf and silently NaN the output.
        assert bool(jnp.all(grid_t[1:] > grid_t[:-1])), \
            "knots must be strictly increasing per input feature"
    if in_pad != in_f:
        # Padded input columns reuse feature 0's (strictly increasing) knots
        # so all bases stay finite; their weight rows are zero anyway.
        pad_cols = jnp.broadcast_to(grid_t[:, :1],
                                    (grid_t.shape[0], in_pad - in_f))
        grid_t = jnp.concatenate([grid_t, pad_cols], axis=1)  # (n_knots, in_pad)

    # Reciprocals 1/(g[j+kk]-g[j]), level by level (token independent).
    rows, offsets, row = [], [], 0
    for kk in range(1, spline_order + 1):
        offsets.append(row)
        for j in range(grid_size + 2 * spline_order - kk + 1):
            rows.append(1.0 / (grid_t[j + kk] - grid_t[j]))
            row += 1
    recips = jnp.stack(rows, axis=0)                           # (R, in_pad)

    def pad_io(w):  # (in_f, out_f) -> (in_pad, out_pad), zero padded
        return jnp.pad(w, ((0, in_pad - in_f), (0, out_pad - out_f)))

    wb_t = pad_io(jnp.asarray(base_weight, jnp.float32).T).astype(compute_dtype)
    wm_t = pad_io(jnp.asarray(mult_weight, jnp.float32).T).astype(compute_dtype)
    # spline_weight (out, in, C) -> (C, in, out) -> pad -> (C*in_pad, out_pad);
    # flat index c*in_pad + i matches the scratch slab layout in the kernel.
    ws = jnp.transpose(jnp.asarray(spline_weight, jnp.float32), (2, 1, 0))
    ws = jnp.pad(ws, ((0, 0), (0, in_pad - in_f), (0, out_pad - out_f)))
    ws_fused = ws.reshape(C * in_pad, out_pad).astype(compute_dtype)

    return dict(grid_t=grid_t, recips=recips, wb_t=wb_t, wm_t=wm_t,
                ws_fused=ws_fused, recip_offsets=tuple(offsets),
                grid_size=grid_size, spline_order=spline_order,
                in_features=in_f, out_features=out_f,
                in_pad=in_pad, out_pad=out_pad, compute_dtype=compute_dtype)


# ----------------------------------------------------------------------------
# Forward wrapper
# ----------------------------------------------------------------------------
def _choose_tile_n(N, tile_n_max):
    """Largest tile in {256..8} whose row padding stays small; split in two if
    it would leave only a single token tile (keeps both v7x TCs busy)."""
    n8 = _round_up(max(N, _SUBLANE), _SUBLANE)
    tile = _SUBLANE
    for cand in (256, 128, 64, 32, 16, 8):
        if cand > tile_n_max:
            continue
        waste = _round_up(n8, cand) - n8
        if waste <= max(n8 // 8, _SUBLANE):
            tile = cand
            break
    if _round_up(n8, tile) // tile < 2 and tile > _SUBLANE:
        tile //= 2
    return tile


def mult_kan_linear(x, params, *, tile_n_max=256, tile_out=None):
    """Pallas MultKANLinear forward. x: (..., in_features)."""
    in_f, in_pad = params["in_features"], params["in_pad"]
    out_f, out_pad = params["out_features"], params["out_pad"]
    G, k = params["grid_size"], params["spline_order"]
    C = G + k
    cdt = params["compute_dtype"]
    assert x.shape[-1] == in_f

    orig_shape = x.shape
    xf = x.reshape(-1, in_f)
    N = xf.shape[0]

    tile_n = _choose_tile_n(N, tile_n_max)
    N_pad = _round_up(max(N, _SUBLANE), tile_n)

    if tile_out is None:
        tile_out = 256 if out_pad % 256 == 0 else _LANE
    assert out_pad % tile_out == 0 and tile_out % _LANE == 0

    # One pad covering both the token tiling and the lane alignment of in_f.
    xf = jnp.pad(xf.astype(jnp.float32), ((0, N_pad - N), (0, in_pad - in_f)))

    grid_t = params["grid_t"]
    recips = params["recips"]
    n_knots = grid_t.shape[0]
    R = recips.shape[0]

    kernel = functools.partial(
        mult_kan_kernel,
        grid_size=G, spline_order=k,
        recip_offsets=params["recip_offsets"],
        compute_dtype=cdt, in_pad=in_pad, chunk_rows=_SUBLANE)

    out_dtype = x.dtype
    cdt_sz = jnp.dtype(cdt).itemsize
    out_sz = jnp.dtype(out_dtype).itemsize
    est = (2 * tile_n * in_pad * 4                       # x (double buffered)
           + 2 * n_knots * in_pad * 4 + 2 * R * in_pad * 4
           + 2 * 2 * in_pad * tile_out * cdt_sz          # wb, wm
           + 2 * C * in_pad * tile_out * cdt_sz          # ws
           + 2 * tile_n * tile_out * out_sz              # out
           + tile_n * C * in_pad * cdt_sz)               # bases scratch
    # Stay inside the v7x 64 MiB physical VMEM; v5e/v6e (128 MiB) could raise.
    vmem_limit = int(min(max(32 << 20, 2 * est), 60 << 20))

    # Grid: token tiles outer ("parallel"), out tiles inner ("arbitrary") so
    # the bases scratch built at j==0 is reused across out tiles.
    pgrid = (N_pad // tile_n, out_pad // tile_out)

    out = pl.pallas_call(
        kernel,
        out_shape=jax.ShapeDtypeStruct((N_pad, out_pad), out_dtype),
        grid_spec=pltpu.PrefetchScalarGridSpec(
            num_scalar_prefetch=0,
            grid=pgrid,
            in_specs=[
                pl.BlockSpec((tile_n, in_pad), lambda i, j: (i, 0)),        # x
                pl.BlockSpec((n_knots, in_pad), lambda i, j: (0, 0)),       # knots
                pl.BlockSpec((R, in_pad), lambda i, j: (0, 0)),             # recips
                pl.BlockSpec((in_pad, tile_out), lambda i, j: (0, j)),      # wb^T
                pl.BlockSpec((in_pad, tile_out), lambda i, j: (0, j)),      # wm^T
                pl.BlockSpec((C * in_pad, tile_out), lambda i, j: (0, j)),  # ws
            ],
            out_specs=pl.BlockSpec((tile_n, tile_out), lambda i, j: (i, j)),
            scratch_shapes=[pltpu.VMEM((tile_n, C * in_pad), cdt)],
        ),
        compiler_params=pltpu.CompilerParams(
            dimension_semantics=("parallel", "arbitrary"),
            vmem_limit_bytes=vmem_limit,
        ),
    )(xf, grid_t, recips, params["wb_t"], params["wm_t"], params["ws_fused"])

    out = out[:N, :out_f]
    return out.reshape(*orig_shape[:-1], out_f)


# ----------------------------------------------------------------------------
# Pure-JAX reference (mirrors the PyTorch forward exactly)
# ----------------------------------------------------------------------------
def ref_forward(x, grid, base_weight, spline_weight, mult_weight,
                *, grid_size=5, spline_order=3):
    orig_shape = x.shape
    in_f = x.shape[-1]
    out_f = base_weight.shape[0]
    xf = x.reshape(-1, in_f)
    xe = xf[:, :, None]

    bases = ((xe >= grid[None, :, :-1]) & (xe < grid[None, :, 1:])).astype(xf.dtype)
    for k in range(1, spline_order + 1):
        bases = ((xe - grid[None, :, :-(k + 1)])
                 / (grid[None, :, k:-1] - grid[None, :, :-(k + 1)]) * bases[:, :, :-1]
                 + (grid[None, :, k + 1:] - xe)
                 / (grid[None, :, k + 1:] - grid[None, :, 1:-k]) * bases[:, :, 1:])

    base_out = jax.nn.silu(xf) @ base_weight.T
    spline_out = bases.reshape(xf.shape[0], -1) @ spline_weight.reshape(out_f, -1).T
    mult_out = (xf @ mult_weight.T) * base_out
    out = base_out + spline_out + mult_out
    return out.reshape(*orig_shape[:-1], out_f)


# ----------------------------------------------------------------------------
# Main
# ----------------------------------------------------------------------------
if __name__ == "__main__":
    in_features = 32
    out_features = 32
    grid_size = 5
    spline_order = 3
    scale_noise = 0.1
    grid_range = (-1.0, 1.0)
    batch, seq = 2, 8

    # Grid buffer (deterministic, same as the PyTorch __init__).
    h = (grid_range[1] - grid_range[0]) / grid_size
    knots = (jnp.arange(-spline_order, grid_size + spline_order + 1,
                        dtype=jnp.float32) * h + grid_range[0])
    grid_buf = jnp.broadcast_to(knots, (in_features, knots.shape[0]))  # (in, G+2k+1)

    # Deterministic parameter init (kaiming-uniform-style bounds).
    # TODO(synk): PyTorch inits spline_weight via curve2coeff (torch.linalg.lstsq
    # over random noise); a deterministic uniform of the same shape/scale is used
    # here instead — forward-pass semantics are unaffected.
    key = jax.random.PRNGKey(0)
    k_base, k_mult, k_spline, k_x = jax.random.split(key, 4)
    bound = 1.0 / math.sqrt(in_features)  # kaiming_uniform with a=sqrt(5)
    base_weight = jax.random.uniform(
        k_base, (out_features, in_features), jnp.float32, -bound, bound)
    mult_weight = jax.random.uniform(
        k_mult, (out_features, in_features), jnp.float32, -bound, bound)
    spline_scale = scale_noise / grid_size
    spline_weight = jax.random.uniform(
        k_spline, (out_features, in_features, grid_size + spline_order),
        jnp.float32, -spline_scale, spline_scale)

    # Example input, mostly inside grid_range.
    x = jax.random.uniform(k_x, (batch, seq, in_features), jnp.float32, -1.0, 1.0)

    ref = ref_forward(x, grid_buf, base_weight, spline_weight, mult_weight,
                      grid_size=grid_size, spline_order=spline_order)

    # 1) exact-precision path (f32 matmuls) — tight semantic check.
    params_f32 = prepare_mult_kan_params(
        grid_buf, base_weight, spline_weight, mult_weight,
        grid_size=grid_size, spline_order=spline_order,
        compute_dtype=jnp.float32)
    out_f32 = jax.block_until_ready(mult_kan_linear(x, params_f32))
    assert out_f32.shape == (batch, seq, out_features), out_f32.shape
    assert jnp.allclose(out_f32, ref, atol=2e-5, rtol=2e-5), \
        float(jnp.max(jnp.abs(out_f32 - ref)))

    # 2) performance path (bf16 matmul operands, f32 accumulation) —
    #    looser tolerance due to bf16 rounding of the dot operands.
    params_bf16 = prepare_mult_kan_params(
        grid_buf, base_weight, spline_weight, mult_weight,
        grid_size=grid_size, spline_order=spline_order,
        compute_dtype=jnp.bfloat16)
    out_bf16 = jax.block_until_ready(mult_kan_linear(x, params_bf16))
    assert out_bf16.shape == (batch, seq, out_features), out_bf16.shape
    assert jnp.allclose(out_bf16, ref, atol=3e-2, rtol=3e-2), \
        float(jnp.max(jnp.abs(out_bf16 - ref)))

    print("KERNEL_OK")
</pallas_src>

<mosaic_0001>
module attributes {stable_mosaic.version = 11 : i64} {
  func.func @mult_kan_kernel(%arg0: i32, %arg1: i32, %arg2: memref<8x128xf32, #tpu.memory_space<vmem>>, %arg3: memref<12x128xf32, #tpu.memory_space<vmem>>, %arg4: memref<30x128xf32, #tpu.memory_space<vmem>>, %arg5: memref<128x128xf32, #tpu.memory_space<vmem>>, %arg6: memref<128x128xf32, #tpu.memory_space<vmem>>, %arg7: memref<1024x128xf32, #tpu.memory_space<vmem>>, %arg8: memref<8x128xf32, #tpu.memory_space<vmem>>, %arg9: memref<8x1024xf32, #tpu.memory_space<vmem>>) attributes {dimension_semantics = [#tpu.dimension_semantics<parallel>, #tpu.dimension_semantics<arbitrary>], iteration_bounds = array<i64: 2, 1>, scalar_prefetch = 0 : i64, scratch_operands = 1 : i64, tpu.core_type = #tpu.core_type<tc>, window_params = [{transform_indices = @transform_0, window_bounds = array<i64: 8, 128>}, {pipeline_mode = #tpu.pipeline_mode<synchronous>, transform_indices = @transform_1, window_bounds = array<i64: 12, 128>}, {pipeline_mode = #tpu.pipeline_mode<synchronous>, transform_indices = @transform_2, window_bounds = array<i64: 30, 128>}, {transform_indices = @transform_3, window_bounds = array<i64: 128, 128>}, {transform_indices = @transform_4, window_bounds = array<i64: 128, 128>}, {transform_indices = @transform_5, window_bounds = array<i64: 1024, 128>}, {transform_indices = @transform_6, window_bounds = array<i64: 8, 128>}]} {
    %c0_i32 = arith.constant 0 : i32
    %0 = arith.cmpi eq, %arg1, %c0_i32 : i32
    %1 = arith.extui %0 : i1 to i32
    %c0_i32_0 = arith.constant 0 : i32
    %2 = arith.cmpi ne, %1, %c0_i32_0 : i32
    scf.if %2 {
      %c0_i32_15 = arith.constant 0 : i32
      %c8_i32 = arith.constant 8 : i32
      %21 = arith.muli %c0_i32_15, %c8_i32 : i32
      %22 = tpu.assume_multiple %21, 8 : i32
      %23 = arith.index_cast %22 : i32 to index
      %c0_16 = arith.constant 0 : index
      %24 = vector.load %arg2[%23, %c0_16] : memref<8x128xf32, #tpu.memory_space<vmem>>, vector<8x128xf32>
      %c0_17 = arith.constant 0 : index
      %c0_18 = arith.constant 0 : index
      %25 = vector.load %arg3[%c0_17, %c0_18] : memref<12x128xf32, #tpu.memory_space<vmem>>, vector<1x128xf32>
      %26 = vector.broadcast %25 : vector<1x128xf32> to vector<8x128xf32>
      %27 = arith.subf %24, %26 : vector<8x128xf32>
      %c1 = arith.constant 1 : index
      %c0_19 = arith.constant 0 : index
      %28 = vector.load %arg3[%c1, %c0_19] : memref<12x128xf32, #tpu.memory_space<vmem>>, vector<1x128xf32>
      %29 = vector.broadcast %28 : vector<1x128xf32> to vector<8x128xf32>
      %30 = arith.subf %24, %29 : vector<8x128xf32>
      %c2 = arith.constant 2 : index
      %c0_20 = arith.constant 0 : index
      %31 = vector.load %arg3[%c2, %c0_20] : memref<12x128xf32, #tpu.memory_space<vmem>>, vector<1x128xf32>
      %32 = vector.broadcast %31 : vector<1x128xf32> to vector<8x128xf32>
      %33 = arith.subf %24, %32 : vector<8x128xf32>
      %c3 = arith.constant 3 : index
      %c0_21 = arith.constant 0 : index
      %34 = vector.load %arg3[%c3, %c0_21] : memref<12x128xf32, #tpu.memory_space<vmem>>, vector<1x128xf32>
      %35 = vector.broadcast %34 : vector<1x128xf32> to vector<8x128xf32>
      %36 = arith.subf %24, %35 : vector<8x128xf32>
      %c4 = arith.constant 4 : index
      %c0_22 = arith.constant 0 : index
      %37 = vector.load %arg3[%c4, %c0_22] : memref<12x128xf32, #tpu.memory_space<vmem>>, vector<1x128xf32>
      %38 = vector.broadcast %37 : vector<1x128xf32> to vector<8x128xf32>
      %39 = arith.subf %24, %38 : vector<8x128xf32>
      %c5 = arith.constant 5 : index
      %c0_23 = arith.constant 0 : index
      %40 = vector.load %arg3[%c5, %c0_23] : memref<12x128xf32, #tpu.memory_space<vmem>>, vector<1x128xf32>
      %41 = vector.broadcast %40 : vector<1x128xf32> to vector<8x128xf32>
      %42 = arith.subf %24, %41 : vector<8x128xf32>
      %c6 = arith.constant 6 : index
      %c0_24 = arith.constant 0 : index
      %43 = vector.load %arg3[%c6, %c0_24] : memref<12x128xf32, #tpu.memory_space<vmem>>, vector<1x128xf32>
      %44 = vector.broadcast %43 : vector<1x128xf32> to vector<8x128xf32>
      %45 = arith.subf %24, %44 : vector<8x128xf32>
      %c7 = arith.constant 7 : index
      %c0_25 = arith.constant 0 : index
      %46 = vector.load %arg3[%c7, %c0_25] : memref<12x128xf32, #tpu.memory_space<vmem>>, vector<1x128xf32>
      %47 = vector.broadcast %46 : vector<1x128xf32> to vector<8x128xf32>
      %48 = arith.subf %24, %47 : vector<8x128xf32>
      %c8 = arith.constant 8 : index
      %c0_26 = arith.constant 0 : index
      %49 = vector.load %arg3[%c8, %c0_26] : memref<12x128xf32, #tpu.memory_space<vmem>>, vector<1x128xf32>
      %50 = vector.broadcast %49 : vector<1x128xf32> to vector<8x128xf32>
      %51 = arith.subf %24, %50 : vector<8x128xf32>
      %c9 = arith.constant 9 : index
      %c0_27 = arith.constant 0 : index
      %52 = vector.load %arg3[%c9, %c0_27] : memref<12x128xf32, #tpu.memory_space<vmem>>, vector<1x128xf32>
      %53 = vector.broadcast %52 : vector<1x128xf32> to vector<8x128xf32>
      %54 = arith.subf %24, %53 : vector<8x128xf32>
      %c10 = arith.constant 10 : index
      %c0_28 = arith.constant 0 : index
      %55 = vector.load %arg3[%c10, %c0_28] : memref<12x128xf32, #tpu.memory_space<vmem>>, vector<1x128xf32>
      %56 = vector.broadcast %55 : vector<1x128xf32> to vector<8x128xf32>
      %57 = arith.subf %24, %56 : vector<8x128xf32>
      %c11 = arith.constant 11 : index
      %c0_29 = arith.constant 0 : index
      %58 = vector.load %arg3[%c11, %c0_29] : memref<12x128xf32, #tpu.memory_space<vmem>>, vector<1x128xf32>
      %59 = vector.broadcast %58 : vector<1x128xf32> to vector<8x128xf32>
      %60 = arith.subf %24, %59 : vector<8x128xf32>
      %c0_30 = arith.constant 0 : index
      %c0_31 = arith.constant 0 : index
      %61 = vector.load %arg3[%c0_30, %c0_31] : memref<12x128xf32, #tpu.memory_space<vmem>>, vector<1x128xf32>
      %62 = vector.broadcast %61 : vector<1x128xf32> to vector<8x128xf32>
      %63 = arith.cmpf oge, %24, %62 : vector<8x128xf32>
      %64 = arith.extui %63 : vector<8x128xi1> to vector<8x128xi32>
      %65 = arith.sitofp %64 : vector<8x128xi32> to vector<8x128xf32>
      %c1_32 = arith.constant 1 : index
      %c0_33 = arith.constant 0 : index
      %66 = vector.load %arg3[%c1_32, %c0_33] : memref<12x128xf32, #tpu.memory_space<vmem>>, vector<1x128xf32>
      %67 = vector.broadcast %66 : vector<1x128xf32> to vector<8x128xf32>
      %68 = arith.cmpf oge, %24, %67 : vector<8x128xf32>
      %69 = arith.extui %68 : vector<8x128xi1> to vector<8x128xi32>
      %70 = arith.sitofp %69 : vector<8x128xi32> to vector<8x128xf32>
      %71 = arith.subf %65, %70 : vector<8x128xf32>
      %c2_34 = arith.constant 2 : index
      %c0_35 = arith.constant 0 : index
      %72 = vector.load %arg3[%c2_34, %c0_35] : memref<12x128xf32, #tpu.memory_space<vmem>>, vector<1x128xf32>
      %73 = vector.broadcast %72 : vector<1x128xf32> to vector<8x128xf32>
      %74 = arith.cmpf oge, %24, %73 : vector<8x128xf32>
      %75 = arith.extui %74 : vector<8x128xi1> to vector<8x128xi32>
      %76 = arith.sitofp %75 : vector<8x128xi32> to vector<8x128xf32>
      %77 = arith.subf %70, %76 : vector<8x128xf32>
      %c3_36 = arith.constant 3 : index
      %c0_37 = arith.constant 0 : index
      %78 = vector.load %arg3[%c3_36, %c0_37] : memref<12x128xf32, #tpu.memory_space<vmem>>, vector<1x128xf32>
      %79 = vector.broadcast %78 : vector<1x128xf32> to vector<8x128xf32>
      %80 = arith.cmpf oge, %24, %79 : vector<8x128xf32>
      %81 = arith.extui %80 : vector<8x128xi1> to vector<8x128xi32>
      %82 = arith.sitofp %81 : vector<8x128xi32> to vector<8x128xf32>
      %83 = arith.subf %76, %82 : vector<8x128xf32>
      %c4_38 = arith.constant 4 : index
      %c0_39 = arith.constant 0 : index
      %84 = vector.load %arg3[%c4_38, %c0_39] : memref<12x128xf32, #tpu.memory_space<vmem>>, vector<1x128xf32>
      %85 = vector.broadcast %84 : vector<1x128xf32> to vector<8x128xf32>
      %86 = arith.cmpf oge, %24, %85 : vector<8x128xf32>
      %87 = arith.extui %86 : vector<8x128xi1> to vector<8x128xi32>
      %88 = arith.sitofp %87 : vector<8x128xi32> to vector<8x128xf32>
      %89 = arith.subf %82, %88 : vector<8x128xf32>
      %c5_40 = arith.constant 5 : index
      %c0_41 = arith.constant 0 : index
      %90 = vector.load %arg3[%c5_40, %c0_41] : memref<12x128xf32, #tpu.memory_space<vmem>>, vector<1x128xf32>
      %91 = vector.broadcast %90 : vector<1x128xf32> to vector<8x128xf32>
      %92 = arith.cmpf oge, %24, %91 : vector<8x128xf32>
      %93 = arith.extui %92 : vector<8x128xi1> to vector<8x128xi32>
      %94 = arith.sitofp %93 : vector<8x128xi32> to vector<8x128xf32>
      %95 = arith.subf %88, %94 : vector<8x128xf32>
      %c6_42 = arith.constant 6 : index
      %c0_43 = arith.constant 0 : index
      %96 = vector.load %arg3[%c6_42, %c0_43] : memref<12x128xf32, #tpu.memory_space<vmem>>, vector<1x128xf32>
      %97 = vector.broadcast %96 : vector<1x128xf32> to vector<8x128xf32>
      %98 = arith.cmpf oge, %24, %97 : vector<8x128xf32>
      %99 = arith.extui %98 : vector<8x128xi1> to vector<8x128xi32>
      %100 = arith.sitofp %99 : vector<8x128xi32> to vector<8x128xf32>
      %101 = arith.subf %94, %100 : vector<8x128xf32>
      %c7_44 = arith.constant 7 : index
      %c0_45 = arith.constant 0 : index
      %102 = vector.load %arg3[%c7_44, %c0_45] : memref<12x128xf32, #tpu.memory_space<vmem>>, vector<1x128xf32>
      %103 = vector.broadcast %102 : vector<1x128xf32> to vector<8x128xf32>
      %104 = arith.cmpf oge, %24, %103 : vector<8x128xf32>
      %105 = arith.extui %104 : vector<8x128xi1> to vector<8x128xi32>
      %106 = arith.sitofp %105 : vector<8x128xi32> to vector<8x128xf32>
      %107 = arith.subf %100, %106 : vector<8x128xf32>
      %c8_46 = arith.constant 8 : index
      %c0_47 = arith.constant 0 : index
      %108 = vector.load %arg3[%c8_46, %c0_47] : memref<12x128xf32, #tpu.memory_space<vmem>>, vector<1x128xf32>
      %109 = vector.broadcast %108 : vector<1x128xf32> to vector<8x128xf32>
      %110 = arith.cmpf oge, %24, %109 : vector<8x128xf32>
      %111 = arith.extui %110 : vector<8x128xi1> to vector<8x128xi32>
      %112 = arith.sitofp %111 : vector<8x128xi32> to vector<8x128xf32>
      %113 = arith.subf %106, %112 : vector<8x128xf32>
      %c9_48 = arith.constant 9 : index
      %c0_49 = arith.constant 0 : index
      %114 = vector.load %arg3[%c9_48, %c0_49] : memref<12x128xf32, #tpu.memory_space<vmem>>, vector<1x128xf32>
      %115 = vector.broadcast %114 : vector<1x128xf32> to vector<8x128xf32>
      %116 = arith.cmpf oge, %24, %115 : vector<8x128xf32>
      %117 = arith.extui %116 : vector<8x128xi1> to vector<8x128xi32>
      %118 = arith.sitofp %117 : vector<8x128xi32> to vector<8x128xf32>
      %119 = arith.subf %112, %118 : vector<8x128xf32>
      %c10_50 = arith.constant 10 : index
      %c0_51 = arith.constant 0 : index
      %120 = vector.load %arg3[%c10_50, %c0_51] : memref<12x128xf32, #tpu.memory_space<vmem>>, vector<1x128xf32>
      %121 = vector.broadcast %120 : vector<1x128xf32> to vector<8x128xf32>
      %122 = arith.cmpf oge, %24, %121 : vector<8x128xf32>
      %123 = arith.extui %122 : vector<8x128xi1> to vector<8x128xi32>
      %124 = arith.sitofp %123 : vector<8x128xi32> to vector<8x128xf32>
      %125 = arith.subf %118, %124 : vector<8x128xf32>
      %c11_52 = arith.constant 11 : index
      %c0_53 = arith.constant 0 : index
      %126 = vector.load %arg3[%c11_52, %c0_53] : memref<12x128xf32, #tpu.memory_space<vmem>>, vector<1x128xf32>
      %127 = vector.broadcast %126 : vector<1x128xf32> to vector<8x128xf32>
      %128 = arith.cmpf oge, %24, %127 : vector<8x128xf32>
      %129 = arith.extui %128 : vector<8x128xi1> to vector<8x128xi32>
      %130 = arith.sitofp %129 : vector<8x128xi32> to vector<8x128xf32>
      %131 = arith.subf %124, %130 : vector<8x128xf32>
      %c0_54 = arith.constant 0 : index
      %c0_55 = arith.constant 0 : index
      %132 = vector.load %arg4[%c0_54, %c0_55] : memref<30x128xf32, #tpu.memory_space<vmem>>, vector<1x128xf32>
      %133 = vector.broadcast %132 : vector<1x128xf32> to vector<8x128xf32>
      %134 = arith.mulf %133, %71 : vector<8x128xf32>
      %c1_56 = arith.constant 1 : index
      %c0_57 = arith.constant 0 : index
      %135 = vector.load %arg4[%c1_56, %c0_57] : memref<30x128xf32, #tpu.memory_space<vmem>>, vector<1x128xf32>
      %136 = vector.broadcast %135 : vector<1x128xf32> to vector<8x128xf32>
      %137 = arith.mulf %136, %77 : vector<8x128xf32>
      %c2_58 = arith.constant 2 : index
      %c0_59 = arith.constant 0 : index
      %138 = vector.load %arg4[%c2_58, %c0_59] : memref<30x128xf32, #tpu.memory_space<vmem>>, vector<1x128xf32>
      %139 = vector.broadcast %138 : vector<1x128xf32> to vector<8x128xf32>
      %140 = arith.mulf %139, %83 : vector<8x128xf32>
      %c3_60 = arith.constant 3 : index
      %c0_61 = arith.constant 0 : index
      %141 = vector.load %arg4[%c3_60, %c0_61] : memref<30x128xf32, #tpu.memory_space<vmem>>, vector<1x128xf32>
      %142 = vector.broadcast %141 : vector<1x128xf32> to vector<8x128xf32>
      %143 = arith.mulf %142, %89 : vector<8x128xf32>
      %c4_62 = arith.constant 4 : index
      %c0_63 = arith.constant 0 : index
      %144 = vector.load %arg4[%c4_62, %c0_63] : memref<30x128xf32, #tpu.memory_space<vmem>>, vector<1x128xf32>
      %145 = vector.broadcast %144 : vector<1x128xf32> to vector<8x128xf32>
      %146 = arith.mulf %145, %95 : vector<8x128xf32>
      %c5_64 = arith.constant 5 : index
      %c0_65 = arith.constant 0 : index
      %147 = vector.load %arg4[%c5_64, %c0_65] : memref<30x128xf32, #tpu.memory_space<vmem>>, vector<1x128xf32>
      %148 = vector.broadcast %147 : vector<1x128xf32> to vector<8x128xf32>
      %149 = arith.mulf %148, %101 : vector<8x128xf32>
      %c6_66 = arith.constant 6 : index
      %c0_67 = arith.constant 0 : index
      %150 = vector.load %arg4[%c6_66, %c0_67] : memref<30x128xf32, #tpu.memory_space<vmem>>, vector<1x128xf32>
      %151 = vector.broadcast %150 : vector<1x128xf32> to vector<8x128xf32>
      %152 = arith.mulf %151, %107 : vector<8x128xf32>
      %c7_68 = arith.constant 7 : index
      %c0_69 = arith.constant 0 : index
      %153 = vector.load %arg4[%c7_68, %c0_69] : memref<30x128xf32, #tpu.memory_space<vmem>>, vector<1x128xf32>
      %154 = vector.broadcast %153 : vector<1x128xf32> to vector<8x128xf32>
      %155 = arith.mulf %154, %113 : vector<8x128xf32>
      %c8_70 = arith.constant 8 : index
      %c0_71 = arith.constant 0 : index
      %156 = vector.load %arg4[%c8_70, %c0_71] : memref<30x128xf32, #tpu.memory_space<vmem>>, vector<1x128xf32>
      %157 = vector.broadcast %156 : vector<1x128xf32> to vector<8x128xf32>
      %158 = arith.mulf %157, %119 : vector<8x128xf32>
      %c9_72 = arith.constant 9 : index
      %c0_73 = arith.constant 0 : index
      %159 = vector.load %arg4[%c9_72, %c0_73] : memref<30x128xf32, #tpu.memory_space<vmem>>, vector<1x128xf32>
      %160 = vector.broadcast %159 : vector<1x128xf32> to vector<8x128xf32>
      %161 = arith.mulf %160, %125 : vector<8x128xf32>
      %c10_74 = arith.constant 10 : index
      %c0_75 = arith.constant 0 : index
      %162 = vector.load %arg4[%c10_74, %c0_75] : memref<30x128xf32, #tpu.memory_space<vmem>>, vector<1x128xf32>
      %163 = vector.broadcast %162 : vector<1x128xf32> to vector<8x128xf32>
      %164 = arith.mulf %163, %131 : vector<8x128xf32>
      %165 = arith.mulf %27, %134 : vector<8x128xf32>
      %166 = arith.mulf %33, %137 : vector<8x128xf32>
      %167 = arith.subf %165, %166 : vector<8x128xf32>
      %168 = arith.mulf %30, %137 : vector<8x128xf32>
      %169 = arith.mulf %36, %140 : vector<8x128xf32>
      %170 = arith.subf %168, %169 : vector<8x128xf32>
      %171 = arith.mulf %33, %140 : vector<8x128xf32>
      %172 = arith.mulf %39, %143 : vector<8x128xf32>
      %173 = arith.subf %171, %172 : vector<8x128xf32>
      %174 = arith.mulf %36, %143 : vector<8x128xf32>
      %175 = arith.mulf %42, %146 : vector<8x128xf32>
      %176 = arith.subf %174, %175 : vector<8x128xf32>
      %177 = arith.mulf %39, %146 : vector<8x128xf32>
      %178 = arith.mulf %45, %149 : vector<8x128xf32>
      %179 = arith.subf %177, %178 : vector<8x128xf32>
      %180 = arith.mulf %42, %149 : vector<8x128xf32>
      %181 = arith.mulf %48, %152 : vector<8x128xf32>
      %182 = arith.subf %180, %181 : vector<8x128xf32>
      %183 = arith.mulf %45, %152 : vector<8x128xf32>
      %184 = arith.mulf %51, %155 : vector<8x128xf32>
      %185 = arith.subf %183, %184 : vector<8x128xf32>
      %186 = arith.mulf %48, %155 : vector<8x128xf32>
      %187 = arith.mulf %54, %158 : vector<8x128xf32>
      %188 = arith.subf %186, %187 : vector<8x128xf32>
      %189 = arith.mulf %51, %158 : vector<8x128xf32>
      %190 = arith.mulf %57, %161 : vector<8x128xf32>
      %191 = arith.subf %189, %190 : vector<8x128xf32>
      %192 = arith.mulf %54, %161 : vector<8x128xf32>
      %193 = arith.mulf %60, %164 : vector<8x128xf32>
      %194 = arith.subf %192, %193 : vector<8x128xf32>
      %c11_76 = arith.constant 11 : index
      %c0_77 = arith.constant 0 : index
      %195 = vector.load %arg4[%c11_76, %c0_77] : memref<30x128xf32, #tpu.memory_space<vmem>>, vector<1x128xf32>
      %196 = vector.broadcast %195 : vector<1x128xf32> to vector<8x128xf32>
      %197 = arith.mulf %196, %167 : vector<8x128xf32>
      %c12 = arith.constant 12 : index
      %c0_78 = arith.constant 0 : index
      %198 = vector.load %arg4[%c12, %c0_78] : memref<30x128xf32, #tpu.memory_space<vmem>>, vector<1x128xf32>
      %199 = vector.broadcast %198 : vector<1x128xf32> to vector<8x128xf32>
      %200 = arith.mulf %199, %170 : vector<8x128xf32>
      %c13 = arith.constant 13 : index
      %c0_79 = arith.constant 0 : index
      %201 = vector.load %arg4[%c13, %c0_79] : memref<30x128xf32, #tpu.memory_space<vmem>>, vector<1x128xf32>
      %202 = vector.broadcast %201 : vector<1x128xf32> to vector<8x128xf32>
      %203 = arith.mulf %202, %173 : vector<8x128xf32>
      %c14 = arith.constant 14 : index
      %c0_80 = arith.constant 0 : index
      %204 = vector.load %arg4[%c14, %c0_80] : memref<30x128xf32, #tpu.memory_space<vmem>>, vector<1x128xf32>
      %205 = vector.broadcast %204 : vector<1x128xf32> to vector<8x128xf32>
      %206 = arith.mulf %205, %176 : vector<8x128xf32>
      %c15 = arith.constant 15 : index
      %c0_81 = arith.constant 0 : index
      %207 = vector.load %arg4[%c15, %c0_81] : memref<30x128xf32, #tpu.memory_space<vmem>>, vector<1x128xf32>
      %208 = vector.broadcast %207 : vector<1x128xf32> to vector<8x128xf32>
      %209 = arith.mulf %208, %179 : vector<8x128xf32>
      %c16 = arith.constant 16 : index
      %c0_82 = arith.constant 0 : index
      %210 = vector.load %arg4[%c16, %c0_82] : memref<30x128xf32, #tpu.memory_space<vmem>>, vector<1x128xf32>
      %211 = vector.broadcast %210 : vector<1x128xf32> to vector<8x128xf32>
      %212 = arith.mulf %211, %182 : vector<8x128xf32>
      %c17 = arith.constant 17 : index
      %c0_83 = arith.constant 0 : index
      %213 = vector.load %arg4[%c17, %c0_83] : memref<30x128xf32, #tpu.memory_space<vmem>>, vector<1x128xf32>
      %214 = vector.broadcast %213 : vector<1x128xf32> to vector<8x128xf32>
      %215 = arith.mulf %214, %185 : vector<8x128xf32>
      %c18 = arith.constant 18 : index
      %c0_84 = arith.constant 0 : index
      %216 = vector.load %arg4[%c18, %c0_84] : memref<30x128xf32, #tpu.memory_space<vmem>>, vector<1x128xf32>
      %217 = vector.broadcast %216 : vector<1x128xf32> to vector<8x128xf32>
      %218 = arith.mulf %217, %188 : vector<8x128xf32>
      %c19 = arith.constant 19 : index
      %c0_85 = arith.constant 0 : index
      %219 = vector.load %arg4[%c19, %c0_85] : memref<30x128xf32, #tpu.memory_space<vmem>>, vector<1x128xf32>
      %220 = vector.broadcast %219 : vector<1x128xf32> to vector<8x128xf32>
      %221 = arith.mulf %220, %191 : vector<8x128xf32>
      %c20 = arith.constant 20 : index
      %c0_86 = arith.constant 0 : index
      %222 = vector.load %arg4[%c20, %c0_86] : memref<30x128xf32, #tpu.memory_space<vmem>>, vector<1x128xf32>
      %223 = vector.broadcast %222 : vector<1x128xf32> to vector<8x128xf32>
      %224 = arith.mulf %223, %194 : vector<8x128xf32>
      %225 = arith.mulf %27, %197 : vector<8x128xf32>
      %226 = arith.mulf %36, %200 : vector<8x128xf32>
      %227 = arith.subf %225, %226 : vector<8x128xf32>
      %228 = arith.mulf %30, %200 : vector<8x128xf32>
      %229 = arith.mulf %39, %203 : vector<8x128xf32>
      %230 = arith.subf %228, %229 : vector<8x128xf32>
      %231 = arith.mulf %33, %203 : vector<8x128xf32>
      %232 = arith.mulf %42, %206 : vector<8x128xf32>
      %233 = arith.subf %231, %232 : vector<8x128xf32>
      %234 = arith.mulf %36, %206 : vector<8x128xf32>
      %235 = arith.mulf %45, %209 : vector<8x128xf32>
      %236 = arith.subf %234, %235 : vector<8x128xf32>
      %237 = arith.mulf %39, %209 : vector<8x128xf32>
      %238 = arith.mulf %48, %212 : vector<8x128xf32>
      %239 = arith.subf %237, %238 : vector<8x128xf32>
      %240 = arith.mulf %42, %212 : vector<8x128xf32>
      %241 = arith.mulf %51, %215 : vector<8x128xf32>
      %242 = arith.subf %240, %241 : vector<8x128xf32>
      %243 = arith.mulf %45, %215 : vector<8x128xf32>
      %244 = arith.mulf %54, %218 : vector<8x128xf32>
      %245 = arith.subf %243, %244 : vector<8x128xf32>
      %246 = arith.mulf %48, %218 : vector<8x128xf32>
      %247 = arith.mulf %57, %221 : vector<8x128xf32>
      %248 = arith.subf %246, %247 : vector<8x128xf32>
      %249 = arith.mulf %51, %221 : vector<8x128xf32>
      %250 = arith.mulf %60, %224 : vector<8x128xf32>
      %251 = arith.subf %249, %250 : vector<8x128xf32>
      %c21 = arith.constant 21 : index
      %c0_87 = arith.constant 0 : index
      %252 = vector.load %arg4[%c21, %c0_87] : memref<30x128xf32, #tpu.memory_space<vmem>>, vector<1x128xf32>
      %253 = vector.broadcast %252 : vector<1x128xf32> to vector<8x128xf32>
      %254 = arith.mulf %253, %227 : vector<8x128xf32>
      %c22 = arith.constant 22 : index
      %c0_88 = arith.constant 0 : index
      %255 = vector.load %arg4[%c22, %c0_88] : memref<30x128xf32, #tpu.memory_space<vmem>>, vector<1x128xf32>
      %256 = vector.broadcast %255 : vector<1x128xf32> to vector<8x128xf32>
      %257 = arith.mulf %256, %230 : vector<8x128xf32>
      %c23 = arith.constant 23 : index
      %c0_89 = arith.constant 0 : index
      %258 = vector.load %arg4[%c23, %c0_89] : memref<30x128xf32, #tpu.memory_space<vmem>>, vector<1x128xf32>
      %259 = vector.broadcast %258 : vector<1x128xf32> to vector<8x128xf32>
      %260 = arith.mulf %259, %233 : vector<8x128xf32>
      %c24 = arith.constant 24 : index
      %c0_90 = arith.constant 0 : index
      %261 = vector.load %arg4[%c24, %c0_90] : memref<30x128xf32, #tpu.memory_space<vmem>>, vector<1x128xf32>
      %262 = vector.broadcast %261 : vector<1x128xf32> to vector<8x128xf32>
      %263 = arith.mulf %262, %236 : vector<8x128xf32>
      %c25 = arith.constant 25 : index
      %c0_91 = arith.constant 0 : index
      %264 = vector.load %arg4[%c25, %c0_91] : memref<30x128xf32, #tpu.memory_space<vmem>>, vector<1x128xf32>
      %265 = vector.broadcast %264 : vector<1x128xf32> to vector<8x128xf32>
      %266 = arith.mulf %265, %239 : vector<8x128xf32>
      %c26 = arith.constant 26 : index
      %c0_92 = arith.constant 0 : index
      %267 = vector.load %arg4[%c26, %c0_92] : memref<30x128xf32, #tpu.memory_space<vmem>>, vector<1x128xf32>
      %268 = vector.broadcast %267 : vector<1x128xf32> to vector<8x128xf32>
      %269 = arith.mulf %268, %242 : vector<8x128xf32>
      %c27 = arith.constant 27 : index
      %c0_93 = arith.constant 0 : index
      %270 = vector.load %arg4[%c27, %c0_93] : memref<30x128xf32, #tpu.memory_space<vmem>>, vector<1x128xf32>
      %271 = vector.broadcast %270 : vector<1x128xf32> to vector<8x128xf32>
      %272 = arith.mulf %271, %245 : vector<8x128xf32>
      %c28 = arith.constant 28 : index
      %c0_94 = arith.constant 0 : index
      %273 = vector.load %arg4[%c28, %c0_94] : memref<30x128xf32, #tpu.memory_space<vmem>>, vector<1x128xf32>
      %274 = vector.broadcast %273 : vector<1x128xf32> to vector<8x128xf32>
      %275 = arith.mulf %274, %248 : vector<8x128xf32>
      %c29 = arith.constant 29 : index
      %c0_95 = arith.constant 0 : index
      %276 = vector.load %arg4[%c29, %c0_95] : memref<30x128xf32, #tpu.memory_space<vmem>>, vector<1x128xf32>
      %277 = vector.broadcast %276 : vector<1x128xf32> to vector<8x128xf32>
      %278 = arith.mulf %277, %251 : vector<8x128xf32>
      %279 = arith.mulf %27, %254 : vector<8x128xf32>
      %280 = arith.mulf %39, %257 : vector<8x128xf32>
      %281 = arith.subf %279, %280 : vector<8x128xf32>
      %282 = arith.mulf %30, %257 : vector<8x128xf32>
      %283 = arith.mulf %42, %260 : vector<8x128xf32>
      %284 = arith.subf %282, %283 : vector<8x128xf32>
      %285 = arith.mulf %33, %260 : vector<8x128xf32>
      %286 = arith.mulf %45, %263 : vector<8x128xf32>
      %287 = arith.subf %285, %286 : vector<8x128xf32>
      %288 = arith.mulf %36, %263 : vector<8x128xf32>
      %289 = arith.mulf %48, %266 : vector<8x128xf32>
      %290 = arith.subf %288, %289 : vector<8x128xf32>
      %291 = arith.mulf %39, %266 : vector<8x128xf32>
      %292 = arith.mulf %51, %269 : vector<8x128xf32>
      %293 = arith.subf %291, %292 : vector<8x128xf32>
      %294 = arith.mulf %42, %269 : vector<8x128xf32>
      %295 = arith.mulf %54, %272 : vector<8x128xf32>
      %296 = arith.subf %294, %295 : vector<8x128xf32>
      %297 = arith.mulf %45, %272 : vector<8x128xf32>
      %298 = arith.mulf %57, %275 : vector<8x128xf32>
      %299 = arith.subf %297, %298 : vector<8x128xf32>
      %300 = arith.mulf %48, %275 : vector<8x128xf32>
      %301 = arith.mulf %60, %278 : vector<8x128xf32>
      %302 = arith.subf %300, %301 : vector<8x128xf32>
      %303 = arith.index_cast %22 : i32 to index
      %c0_96 = arith.constant 0 : index
      %304 = vector.load %arg9[%303, %c0_96] : memref<8x1024xf32, #tpu.memory_space<vmem>>, vector<8x128xf32>
      tpu.vector_store %arg9[%303, %c0_96], %281 {strides = array<i32>} : memref<8x1024xf32, #tpu.memory_space<vmem>>, vector<8x128xf32>,
      %305 = arith.index_cast %22 : i32 to index
      %c128 = arith.constant 128 : index
      %306 = vector.load %arg9[%305, %c128] : memref<8x1024xf32, #tpu.memory_space<vmem>>, vector<8x128xf32>
      tpu.vector_store %arg9[%305, %c128], %284 {strides = array<i32>} : memref<8x1024xf32, #tpu.memory_space<vmem>>, vector<8x128xf32>,
      %307 = arith.index_cast %22 : i32 to index
      %c256 = arith.constant 256 : index
      %308 = vector.load %arg9[%307, %c256] : memref<8x1024xf32, #tpu.memory_space<vmem>>, vector<8x128xf32>
      tpu.vector_store %arg9[%307, %c256], %287 {strides = array<i32>} : memref<8x1024xf32, #tpu.memory_space<vmem>>, vector<8x128xf32>,
      %309 = arith.index_cast %22 : i32 to index
      %c384 = arith.constant 384 : index
      %310 = vector.load %arg9[%309, %c384] : memref<8x1024xf32, #tpu.memory_space<vmem>>, vector<8x128xf32>
      tpu.vector_store %arg9[%309, %c384], %290 {strides = array<i32>} : memref<8x1024xf32, #tpu.memory_space<vmem>>, vector<8x128xf32>,
      %311 = arith.index_cast %22 : i32 to index
      %c512 = arith.constant 512 : index
      %312 = vector.load %arg9[%311, %c512] : memref<8x1024xf32, #tpu.memory_space<vmem>>, vector<8x128xf32>
      tpu.vector_store %arg9[%311, %c512], %293 {strides = array<i32>} : memref<8x1024xf32, #tpu.memory_space<vmem>>, vector<8x128xf32>,
      %313 = arith.index_cast %22 : i32 to index
      %c640 = arith.constant 640 : index
      %314 = vector.load %arg9[%313, %c640] : memref<8x1024xf32, #tpu.memory_space<vmem>>, vector<8x128xf32>
      tpu.vector_store %arg9[%313, %c640], %296 {strides = array<i32>} : memref<8x1024xf32, #tpu.memory_space<vmem>>, vector<8x128xf32>,
      %315 = arith.index_cast %22 : i32 to index
      %c768 = arith.constant 768 : index
      %316 = vector.load %arg9[%315, %c768] : memref<8x1024xf32, #tpu.memory_space<vmem>>, vector<8x128xf32>
      tpu.vector_store %arg9[%315, %c768], %299 {strides = array<i32>} : memref<8x1024xf32, #tpu.memory_space<vmem>>, vector<8x128xf32>,
      %317 = arith.index_cast %22 : i32 to index
      %c896 = arith.constant 896 : index
      %318 = vector.load %arg9[%317, %c896] : memref<8x1024xf32, #tpu.memory_space<vmem>>, vector<8x128xf32>
      tpu.vector_store %arg9[%317, %c896], %302 {strides = array<i32>} : memref<8x1024xf32, #tpu.memory_space<vmem>>, vector<8x128xf32>,
      %c1_i32 = arith.constant 1 : i32
    } else {
    }
    %c0 = arith.constant 0 : index
    %c0_1 = arith.constant 0 : index
    %3 = vector.load %arg2[%c0, %c0_1] : memref<8x128xf32, #tpu.memory_space<vmem>>, vector<8x128xf32>
    %4 = arith.negf %3 : vector<8x128xf32>
    %5 = math.exp %4 : vector<8x128xf32>
    %cst = arith.constant 1.000000e+00 : f32
    %6 = vector.broadcast %cst : f32 to vector<8x128xf32>
    %7 = arith.addf %6, %5 : vector<8x128xf32>
    %8 = arith.divf %6, %7 : vector<8x128xf32>
    %9 = arith.mulf %3, %8 : vector<8x128xf32>
    %c0_2 = arith.constant 0 : index
    %c0_3 = arith.constant 0 : index
    %10 = vector.load %arg5[%c0_2, %c0_3] : memref<128x128xf32, #tpu.memory_space<vmem>>, vector<128x128xf32>
    %cst_4 = arith.constant dense<0.000000e+00> : vector<8x128xf32>
    %11 = tpu.matmul %9, %10, %cst_4 {dimension_numbers = #tpu.dot_dimension_numbers<[1], [0], [0], [1], [0, 0, 1, 1], [], []>} : vector<8x128xf32>, vector<128x128xf32>, vector<8x128xf32> -> vector<8x128xf32>
    %c0_5 = arith.constant 0 : index
    %c0_6 = arith.constant 0 : index
    %12 = vector.load %arg6[%c0_5, %c0_6] : memref<128x128xf32, #tpu.memory_space<vmem>>, vector<128x128xf32>
    %cst_7 = arith.constant dense<0.000000e+00> : vector<8x128xf32>
    %13 = tpu.matmul %3, %12, %cst_7 {dimension_numbers = #tpu.dot_dimension_numbers<[1], [0], [0], [1], [0, 0, 1, 1], [], []>} : vector<8x128xf32>, vector<128x128xf32>, vector<8x128xf32> -> vector<8x128xf32>
    %c0_8 = arith.constant 0 : index
    %c0_9 = arith.constant 0 : index
    %14 = vector.load %arg9[%c0_8, %c0_9] : memref<8x1024xf32, #tpu.memory_space<vmem>>, vector<8x1024xf32>
    %c0_10 = arith.constant 0 : index
    %c0_11 = arith.constant 0 : index
    %15 = vector.load %arg7[%c0_10, %c0_11] : memref<1024x128xf32, #tpu.memory_space<vmem>>, vector<1024x128xf32>
    %cst_12 = arith.constant dense<0.000000e+00> : vector<8x128xf32>
    %16 = tpu.matmul %14, %15, %cst_12 {dimension_numbers = #tpu.dot_dimension_numbers<[1], [0], [0], [1], [0, 0, 1, 1], [], []>} : vector<8x1024xf32>, vector<1024x128xf32>, vector<8x128xf32> -> vector<8x128xf32>
    %17 = arith.addf %11, %16 : vector<8x128xf32>
    %18 = arith.mulf %13, %11 : vector<8x128xf32>
    %19 = arith.addf %17, %18 : vector<8x128xf32>
    %c0_13 = arith.constant 0 : index
    %c0_14 = arith.constant 0 : index
    %20 = vector.load %arg8[%c0_13, %c0_14] : memref<8x128xf32, #tpu.memory_space<vmem>>, vector<8x128xf32>
    tpu.vector_store %arg8[%c0_13, %c0_14], %19 {strides = array<i32>} : memref<8x128xf32, #tpu.memory_space<vmem>>, vector<8x128xf32>,
    return
  }
  func.func @transform_0(%arg0: i32, %arg1: i32) -> (i32, i32) {
    %c0_i32 = arith.constant 0 : i32
    %c0_i32_0 = arith.constant 0 : i32
    return %arg0, %c0_i32 : i32, i32
  }
  func.func @transform_1(%arg0: i32, %arg1: i32) -> (i32, i32) {
    %c0_i32 = arith.constant 0 : i32
    %c0_i32_0 = arith.constant 0 : i32
    %c0_i32_1 = arith.constant 0 : i32
    return %c0_i32, %c0_i32_0 : i32, i32
  }
  func.func @transform_2(%arg0: i32, %arg1: i32) -> (i32, i32) {
    %c0_i32 = arith.constant 0 : i32
    %c0_i32_0 = arith.constant 0 : i32
    %c0_i32_1 = arith.constant 0 : i32
    return %c0_i32, %c0_i32_0 : i32, i32
  }
  func.func @transform_3(%arg0: i32, %arg1: i32) -> (i32, i32) {
    %c0_i32 = arith.constant 0 : i32
    %c0_i32_0 = arith.constant 0 : i32
    return %c0_i32, %arg1 : i32, i32
  }
  func.func @transform_4(%arg0: i32, %arg1: i32) -> (i32, i32) {
    %c0_i32 = arith.constant 0 : i32
    %c0_i32_0 = arith.constant 0 : i32
    return %c0_i32, %arg1 : i32, i32
  }
  func.func @transform_5(%arg0: i32, %arg1: i32) -> (i32, i32) {
    %c0_i32 = arith.constant 0 : i32
    %c0_i32_0 = arith.constant 0 : i32
    return %c0_i32, %arg1 : i32, i32
  }
  func.func @transform_6(%arg0: i32, %arg1: i32) -> (i32, i32) {
    %c0_i32 = arith.constant 0 : i32
    return %arg0, %arg1 : i32, i32
  }
}

</mosaic_0001>

<bundles_post_ra>
// kernel: tpu_custom_call.1
= control target key start
LH: loop header
LB: loop body
LE: loop exit
PB: predicated region body
PF: predicated region fallthrough
CT: control target
= control target key end

     0   :  { %s2069_s0 = inlined_call_operand.hbm [shape: f32[16,128], index: 0, kind: input, shape index: {}]   ;;  %s2070_s1 = inlined_call_operand.hbm [shape: f32[12,128], index: 1, kind: input, shape index: {}]   ;;  %s2071_s2 = inlined_call_operand.hbm [shape: f32[30,128], index: 2, kind: input, shape index: {}]   ;;  %s2072_s3 = inlined_call_operand.hbm [shape: f32[128,128], index: 3, kind: input, shape index: {}]   ;;  %s2073_s4 = inlined_call_operand.hbm [shape: f32[128,128], index: 4, kind: input, shape index: {}]   ;;  %s2074_s5 = inlined_call_operand.hbm [shape: f32[1024,128], index: 5, kind: input, shape index: {}]   ;;  %s2075_s6 = inlined_call_operand.hbm [shape: f32[16,128], index: 6, kind: output, shape index: {}]  }
   0x1   :  { %2076 = sst [smem:[#allocation20_spill]] %s2070_s1 }
   0x2   :  { %11 = vsyncpa [#allocation4], 0 }
   0x3   :  { %13 = vsyncpa [#allocation4 + $0x1], 0 }
   0x4   :  { %14 = vsyncpa [#allocation7], 0 }
   0x5   :  { %15 = vsyncpa [#allocation10], 0 }
   0x6   :  { %16 = vsyncpa [#allocation13], 0 }
   0x7   :  { %17 = vsyncpa [#allocation5], 0 }
   0x8   :  { %19 = vsyncpa [#allocation5 + $0x1], 0  ;;  %s1717_s21 = smov 0   ;;  %s1719_s22 = smov 0  }
   0x9   :  { %s1721_s23 = smov 0   ;;  %s1723_s24 = smov 0  }
   0xa   :  { %s1725_s25 = smov 0   ;;  %s1727_s26 = smov 0  }
   0xb LB: > { %s1200_s27 = sadd.s32 4294967295, %s1672_s26   ;;  %p1202_p0 = scmp.ge.s32.totalorder %s1672_s26, 1  ;;  %s1672_s26 = sphi %s1727_s26, %s25_s26   ;;  %s1668_s25 = sphi %s1725_s25, %s2093_s25   ;;  %s1664_s24 = sphi %s1723_s24, %s2092_s24   ;;  %s1660_s23 = sphi %s1721_s23, %s2091_s23   ;;  %s1656_s22 = sphi %s1719_s22, %s2090_s22   ;;  %s1652_s21 = sphi %s1717_s21, %s2089_s21  }
   0xc   : > { %p1751_p1 = scmp.eq.s32.totalorder %s1200_s27, 0  ;;  %p216_p2 = scmp.lt.s32.totalorder %s1672_s26, 3 }
   0xd   : > { %s2078_s1 = sld [smem:[#allocation20_spill]]  ;;  %s1674_s9 = smov [#allocation6]  }
   0xe   : > { %p1759_p3 = pnand %p1202_p0, %p216_p2  ;;  %s229_s10 = sshll.u32 %s1674_s9, 4  ;;  %s230_s10 = int_to_ptr.vmem [resolvable:$true] %s229_s10 }
   0xf   : > { %p1208_p6 = scmp.ge.s32.totalorder %s1672_s26, 2  ;;  %s257_s14 = sshll.u32 %s2072_s3, 4  ;;  %s258_s14 = int_to_ptr.hbm [resolvable:$true] %s257_s14 }
  0x10   : > { %p1260_p4 = pneg %p1759_p3  ;;  %s1675_s15 = smov 128  }
  0x11   : > { %s1676_s16 = smov 8   ;;  %s1677_s17 = smov [#allocation9]  }
  0x12   : > { %p1767_p5 = pnand %p1260_p4, %p1751_p1  ;;  %s259_s18 = sshll.u32 %s1677_s17, 4  ;;  %s260_s18 = int_to_ptr.vmem [resolvable:$true] %s259_s18 }
  0x13   : > { %s227_s7 = sshll.u32 %s2078_s1, 4  ;;  %s241_s29 = sshll.u32 %s2071_s2, 4  ;;  %s228_s7 = int_to_ptr.hbm [resolvable:$true] %s227_s7  ;;  %s242_s29 = int_to_ptr.hbm [resolvable:$true] %s241_s29 }
  0x14   : > { %1263 = dma.hbm_to_vmem [thread:$0]  (!%p1767_p5), %s228_s7, 256, %s230_s10, [#allocation7], %s1675_s15, %s1675_s15, %s1676_s16  }
  0x15   : > { %1269 = dma.hbm_to_vmem [thread:$0]  (!%p1767_p5), %s258_s14, 2048, %s260_s18, [#allocation10], %s1675_s15, %s1675_s15, %s1676_s16  }
  0x16   : > { %s273_s12 = sshll.u32 %s2073_s4, 4  ;;  %s1678_s13 = smov [#allocation8]   ;;  %s274_s12 = int_to_ptr.hbm [resolvable:$true] %s273_s12 }
  0x17   : > { %s243_s7 = sshll.u32 %s1678_s13, 4  ;;  %s1679_s10 = smov [#allocation11]   ;;  %s244_s7 = int_to_ptr.vmem [resolvable:$true] %s243_s7 }
  0x18   : > { %1266 = dma.hbm_to_vmem [thread:$0]  (!%p1767_p5), %s242_s29, 512, %s244_s7, [#allocation7], %s1675_s15, %s1675_s15, %s1676_s16  }
  0x19   : > { %s275_s14 = sshll.u32 %s1679_s10, 4  ;;  %s289_s19 = sshll.u32 %s2074_s5, 4  ;;  %s276_s14 = int_to_ptr.vmem [resolvable:$true] %s275_s14  ;;  %s290_s19 = int_to_ptr.hbm [resolvable:$true] %s289_s19 }
  0x1a   : > { %1272 = dma.hbm_to_vmem [thread:$0]  (!%p1767_p5), %s274_s12, 2048, %s276_s14, [#allocation10], %s1675_s15, %s1675_s15, %s1676_s16  }
  0x1b   : > { %s1680_s20 = smov [#allocation12]   ;;  %s1201_s29 = sadd.s32 4294967294, %s1672_s26  }
  0x1c   : > { %s291_s30 = sshll.u32 %s1680_s20, 4  ;;  %s37_s9 = sadd.s32 1, %s1668_s25  ;;  %s292_s30 = int_to_ptr.vmem [resolvable:$true] %s291_s30 }
  0x1d   : > { %1275 = dma.hbm_to_vmem [thread:$0]  (!%p1767_p5), %s290_s19, 16384, %s292_s30, [#allocation13], %s1675_s15, %s1675_s15, %s1676_s16  }
  0x1e   : > { %s44_s13 = sadd.s32 1, %s1660_s23  ;;  %p39_p7 = scmp.ge.s32.totalorder %s37_s9, 2 }
  0x1f   : > { %p51_p8 = scmp.ne.s32.totalorder %s1660_s23, %s1656_s22  ;;  %p52_p9 = scmp.eq.s32.totalorder %s1672_s26, 0 }
  0x20   : > { %p57_p10 = scmp.ne.s32.totalorder %s1656_s22, %s1652_s21  ;;  %s2095_s9 = smov (%p39_p7, %s37_s9), 0 }
  0x21   : > { %p1804_p11 = por %p52_p9, %p51_p8  ;;  %s41_s15 = ssub.s32 %s1668_s25, %s2095_s9 }
  0x22   : > { %p1810_p12 = por %p1751_p1, %p57_p10  ;;  %p203_p13 = scmp.eq.s32.totalorder %s1200_s27, 1 }
  0x23   : > { %p42_p0 = scmp.eq.s32.totalorder %s41_s15, 0  ;;  %p209_p2 = scmp.eq.s32.totalorder %s1201_s29, 1 }
  0x24   : > { %p1818_p4 = por %p203_p13, %p51_p8  ;;  %p1289_p5 = scmp.lt.s32.totalorder %s1672_s26, 2 }
  0x25   : > { %s1824_s7 = scalar_select %p42_p0, %s1660_s23, %s44_s13  }
  0x26   : > { %p1826_p7 = por %p209_p2, %p57_p10  ;;  %s305_s14 = sand.u32 1, %s1660_s23  }
  0x27   : > { %s1209_s17 = sshll.u32 %s305_s14, 3  ;;  %s1210_s18 = sshll.u32 %s1668_s25, 3 }
  0x28   : > { %s313_s27 = scalar_lea.hbm %s2069_s0, %s1210_s18  ;;  %s309_s30 = scalar_lea.vmem [#allocation3], %s1209_s17 }
  0x29   : > { %s317_s29 = sshll.u32 %s309_s30, 4  ;;  %s315_s15 = sshll.u32 %s313_s27, 4  ;;  %s318_s29 = int_to_ptr.vmem [resolvable:$true] %s317_s29  ;;  %s316_s15 = int_to_ptr.hbm [resolvable:$true] %s315_s15 }
  0x2a   : > { %p1277_p8 = pnand %p1289_p5, %p1804_p11  ;;  %s306_s13 = scalar_lea.sflag [#allocation4], %s305_s14 }
  0x2b   : > { %326 = sbr.rel (%p1759_p3) target bundleno = 291 (0x123), region = 44  ;;  %s1840_s1 = sand.u32 (!%p1759_p3), 1, %s1656_s22  }
  0x2c   : > { %1279 = dma.hbm_to_vmem [thread:$0]  (!%p1277_p8), %s316_s15, 128, %s318_s29, %s306_s13  }
  0x2d   : > { %s1212_s18 = sshll.u32 (!%p1759_p3), %s1840_s1, 3  ;;  %s329_s17 = scalar_lea.sflag (!%p1759_p3), [#allocation4], %s1840_s1 }
  0x2e   : > { %s1846_s19 = scalar_lea.vmem (!%p1759_p3), [#allocation3], %s1212_s18 }
  0x30   : > { %1631 = dma.done.wait (%p1810_p12), %s329_s17, 128  }
  0x31   : > { %1633 = vsyncadd (%p1810_p12), %s329_s17, 4294967168 }
  0x32   : > { %1635 = dma.done.wait (%p1751_p1), [#allocation7], 768  }
  0x33   : > { %1637 = vsyncadd (%p1751_p1), [#allocation7], 4294966528 }
  0x34   : > { %1639 = dma.done.wait (%p1751_p1), [#allocation10], 4096  }
  0x35   : > { %1641 = vsyncadd (%p1751_p1), [#allocation10], 4294963200 }
  0x36   : > { %1643 = dma.done.wait (%p1751_p1), [#allocation13], 16384  }
  0x37   : > { %1645 = vsyncadd (%p1751_p1), [#allocation13], 4294950912  ;;  %v693_v0 = vld [vmem:[#allocation9 + $0x78] sm:$0xff]  ;;  %v692_v1 = vld [vmem:[#allocation9 + $0x70] sm:$0xff]  ;;  %s1233_s28 = sshll.u32 %s1664_s24, 3  ;;  %s386_s14 = scalar_lea.vmem [#allocation14], %s1212_s18 }
  0x38   : > { %v729_v2 = vld [vmem:[#allocation11 + $0x78] sm:$0xff]  ;;  %694 = vmatpush.msra.mxu0 %v693_v0  ;;  %v728_v3 = vld [vmem:[#allocation11 + $0x70] sm:$0xff]  ;;  %v691_v4 = vld [vmem:[#allocation9 + $0x68] sm:$0xff]  ;;  %s1062_s11 = scalar_lea.hbm %s2075_s6, %s1233_s28  ;;  %s1064_s20 = sshll.u32 %s386_s14, 4  ;;  %s1065_s20 = int_to_ptr.vmem [resolvable:$true] %s1064_s20 }
  0x39   : > { %730 = vmatpush.msra.mxu1 %v729_v2  ;;  %v727_v5 = vld [vmem:[#allocation11 + $0x68] sm:$0xff]  ;;  %v690_v6 = vld [vmem:[#allocation9 + $0x60] sm:$0xff]  ;;  %v689_v8 = vld [vmem:[#allocation9 + $0x58] sm:$0xff]  ;;  %s1066_s27 = sshll.u32 %s1062_s11, 4  ;;  %s1051_s30 = scalar_lea.sflag [#allocation5], %s1840_s1  ;;  %s1067_s27 = int_to_ptr.hbm [resolvable:$true] %s1066_s27 }
  0x3a   : > { %695 = vmatpush.msra.mxu0 %v692_v1  ;;  %v726_v7 = vld [vmem:[#allocation11 + $0x60] sm:$0xff]  ;;  %v725_v9 = vld [vmem:[#allocation11 + $0x58] sm:$0xff]  ;;  %v772_v11 = vld [vmem:[#allocation12 + $0x70] sm:$0xff]  ;;  %s1592_s24 = sshra.s32 %s1067_s27, 4  ;;  %s1598_s18 = scalar_lea.hbm %s2075_s6, 16  ;;  %s1593_s24 = int_to_ptr.hbm [resolvable:$true] %s1592_s24 }
  0x3b   : > { %731 = vmatpush.msra.mxu1 %v728_v3  ;;  %v773_v10 = vld [vmem:[#allocation12 + $0x78] sm:$0xff]  ;;  %v688_v13 = vld [vmem:[#allocation9 + $0x50] sm:$0xff]  ;;  %v771_v15 = vld [vmem:[#allocation12 + $0x68] sm:$0xff]  ;;  %s1594_s29 = scalar_lea.hbm %s1593_s24, 8  ;;  %p1599_p10 = scmp.lt.s32.totalorder %s1593_s24, %s2075_s6 }
  0x3c   : > { %696 = vmatpush.msra.mxu0 %v691_v4  ;;  %v789_v12 = vld [vmem:[#allocation12 + $0xf8] sm:$0xff]  ;;  %v724_v14 = vld [vmem:[#allocation11 + $0x50] sm:$0xff]  ;;  %886 = vmatpush.msra.mxu2 %v773_v10  ;;  %v687_v17 = vld [vmem:[#allocation9 + $0x48] sm:$0xff]  ;;  %p1595_p1 = scmp.ne.s32.totalorder %s1593_s24, %s1594_s29  ;;  %p1600_p11 = scmp.lt.s32.totalorder %s1598_s18, %s1594_s29 }
  0x3d   : > { %732 = vmatpush.msra.mxu1 %v727_v5  ;;  %906 = vmatpush.msra.mxu3 %v789_v12  ;;  %v788_v16 = vld [vmem:[#allocation12 + $0xf0] sm:$0xff]  ;;  %v723_v18 = vld [vmem:[#allocation11 + $0x48] sm:$0xff]  ;;  %v770_v20 = vld [vmem:[#allocation12 + $0x60] sm:$0xff] }
  0x3e   : > { %697 = vmatpush.msra.mxu0 %v690_v6  ;;  %887 = vmatpush.msra.mxu2 %v772_v11  ;;  %v787_v19 = vld [vmem:[#allocation12 + $0xe8] sm:$0xff]  ;;  %v786_v21 = vld [vmem:[#allocation12 + $0xe0] sm:$0xff]  ;;  %v769_v24 = vld [vmem:[#allocation12 + $0x58] sm:$0xff]  ;;  %p1596_p3 = pnand %p1595_p1, %p1818_p4  ;;  %p1601_p12 = por %p1600_p11, %p1599_p10 }
  0x3f   : > { %733 = vmatpush.msra.mxu1 %v726_v7  ;;  %907 = vmatpush.msra.mxu3 %v788_v16  ;;  %v686_v22 = vld [vmem:[#allocation9 + $0x40] sm:$0xff]  ;;  %v785_v25 = vld [vmem:[#allocation12 + $0xd8] sm:$0xff]  ;;  %v768_v28 = vld [vmem:[#allocation12 + $0x50] sm:$0xff] }
  0x40   : > { %698 = vmatpush.msra.mxu0 %v689_v8  ;;  %v722_v23 = vld [vmem:[#allocation11 + $0x40] sm:$0xff]  ;;  %888 = vmatpush.msra.mxu2 %v771_v15  ;;  %v685_v26 = vld [vmem:[#allocation9 + $0x38] sm:$0xff]  ;;  %v784_v29 = vld [vmem:[#allocation12 + $0xd0] sm:$0xff]  ;;  %p1597_p9 = pneg %p1596_p3 }
  0x41   : > { %734 = vmatpush.msra.mxu1 %v725_v9  ;;  %908 = vmatpush.msra.mxu3 %v787_v19  ;;  %v721_v27 = vld [vmem:[#allocation11 + $0x38] sm:$0xff]  ;;  %v684_v30 = vld [vmem:[#allocation9 + $0x30] sm:$0xff]  ;;  %v767_v32 = vld [vmem:[#allocation12 + $0x48] sm:$0xff] }
  0x42   : > { %699 = vmatpush.msra.mxu0 %v688_v13  ;;  %889 = vmatpush.msra.mxu2 %v770_v20  ;;  %v720_v31 = vld [vmem:[#allocation11 + $0x30] sm:$0xff]  ;;  %v783_v33 = vld [vmem:[#allocation12 + $0xc8] sm:$0xff]  ;;  %v766_v36 = vld [vmem:[#allocation12 + $0x40] sm:$0xff]  ;;  %p1602_p13 = pnand %p1601_p12, %p1597_p9 }
  0x43   : > { %735 = vmatpush.msra.mxu1 %v724_v14  ;;  %909 = vmatpush.msra.mxu3 %v786_v21  ;;  %v683_v34 = vld [vmem:[#allocation9 + $0x28] sm:$0xff]  ;;  %v782_v37 = vld [vmem:[#allocation12 + $0xc0] sm:$0xff]  ;;  %v765_v40 = vld [vmem:[#allocation12 + $0x38] sm:$0xff] }
  0x44   : > { %700 = vmatpush.msra.mxu0 %v687_v17  ;;  %890 = vmatpush.msra.mxu2 %v769_v24  ;;  %v719_v35 = vld [vmem:[#allocation11 + $0x28] sm:$0xff]  ;;  %v682_v38 = vld [vmem:[#allocation9 + $0x20] sm:$0xff]  ;;  %v781_v41 = vld [vmem:[#allocation12 + $0xb8] sm:$0xff] }
  0x45   : > { %736 = vmatpush.msra.mxu1 %v723_v18  ;;  %910 = vmatpush.msra.mxu3 %v785_v25  ;;  %v718_v39 = vld [vmem:[#allocation11 + $0x20] sm:$0xff]  ;;  %v681_v42 = vld [vmem:[#allocation9 + $0x18] sm:$0xff]  ;;  %v764_v44 = vld [vmem:[#allocation12 + $0x30] sm:$0xff] }
  0x46   : > { %701 = vmatpush.msra.mxu0 %v686_v22  ;;  %891 = vmatpush.msra.mxu2 %v768_v28  ;;  %v717_v43 = vld [vmem:[#allocation11 + $0x18] sm:$0xff]  ;;  %v780_v45 = vld [vmem:[#allocation12 + $0xb0] sm:$0xff]  ;;  %v763_v48 = vld [vmem:[#allocation12 + $0x28] sm:$0xff] }
  0x47   : > { %737 = vmatpush.msra.mxu1 %v722_v23  ;;  %911 = vmatpush.msra.mxu3 %v784_v29  ;;  %v680_v46 = vld [vmem:[#allocation9 + $0x10] sm:$0xff]  ;;  %v779_v49 = vld [vmem:[#allocation12 + $0xa8] sm:$0xff]  ;;  %v762_v52 = vld [vmem:[#allocation12 + $0x20] sm:$0xff] }
  0x48   : > { %702 = vmatpush.msra.mxu0 %v685_v26  ;;  %892 = vmatpush.msra.mxu2 %v767_v32  ;;  %v716_v47 = vld [vmem:[#allocation11 + $0x10] sm:$0xff]  ;;  %v679_v50 = vld [vmem:[#allocation9 + $0x8] sm:$0xff]  ;;  %v778_v53 = vld [vmem:[#allocation12 + $0xa0] sm:$0xff] }
  0x49   : > { %738 = vmatpush.msra.mxu1 %v721_v27  ;;  %912 = vmatpush.msra.mxu3 %v783_v33  ;;  %v715_v51 = vld [vmem:[#allocation11 + $0x8] sm:$0xff]  ;;  %v678_v54 = vld [vmem:[#allocation9] sm:$0xff]  ;;  %v805_v56 = vld [vmem:[#allocation12 + $0x178] sm:$0xff] }
  0x4a   : > { %703 = vmatpush.msra.mxu0 %v684_v30  ;;  %893 = vmatpush.msra.mxu2 %v766_v36  ;;  %v714_v55 = vld [vmem:[#allocation11] sm:$0xff]  ;;  %v821_v57 = vld [vmem:[#allocation12 + $0x1f8] sm:$0xff]  ;;  %v804_v60 = vld [vmem:[#allocation12 + $0x170] sm:$0xff] }
  0x4b   : > { %739 = vmatpush.msra.mxu1 %v720_v31  ;;  %913 = vmatpush.msra.mxu3 %v782_v37  ;;  %v761_v58 = vld [vmem:[#allocation12 + $0x18] sm:$0xff]  ;;  %v820_v61 = vld [vmem:[#allocation12 + $0x1f0] sm:$0xff]  ;;  %v803_v0 = vld [vmem:[#allocation12 + $0x168] sm:$0xff]  ;;  %v1681_v37 = vmov 0.0  }
  0x4c   : > { %704 = vmatpush.msra.mxu0 %v683_v34  ;;  %894 = vmatpush.msra.mxu2 %v765_v40  ;;  %v777_v59 = vld [vmem:[#allocation12 + $0x98] sm:$0xff]  ;;  %v760_v62 = vld [vmem:[#allocation12 + $0x10] sm:$0xff]  ;;  %v819_v1 = vld [vmem:[#allocation12 + $0x1e8] sm:$0xff] }
  0x4d   : > { %740 = vmatpush.msra.mxu1 %v719_v35  ;;  %914 = vmatpush.msra.mxu3 %v781_v41  ;;  %v776_v63 = vld [vmem:[#allocation12 + $0x90] sm:$0xff]  ;;  %v759_v2 = vld [vmem:[#allocation12 + $0x8] sm:$0xff]  ;;  %v802_v4 = vld [vmem:[#allocation12 + $0x160] sm:$0xff] }
  0x4e   : > { %705 = vmatpush.msra.mxu0 %v682_v38  ;;  %895 = vmatpush.msra.mxu2 %v764_v44  ;;  %v775_v3 = vld [vmem:[#allocation12 + $0x88] sm:$0xff]  ;;  %v818_v5 = vld [vmem:[#allocation12 + $0x1e0] sm:$0xff]  ;;  %v801_v10 = vld [vmem:[#allocation12 + $0x158] sm:$0xff] }
  0x4f   : > { %741 = vmatpush.msra.mxu1 %v718_v39  ;;  %915 = vmatpush.msra.mxu3 %v780_v45  ;;  %v1865_v6 = vld [vmem:[%s1846_s19] sm:$0xff]  ;;  %v817_v11 = vld [vmem:[#allocation12 + $0x1d8] sm:$0xff]  ;;  %v800_v14 = vld [vmem:[#allocation12 + $0x150] sm:$0xff] }
  0x50   : > { %706 = vmatpush.msra.mxu0 %v681_v42  ;;  %896 = vmatpush.msra.mxu2 %v763_v48  ;;  %v758_v7 = vld [vmem:[#allocation12] sm:$0xff]  ;;  %v1231_v9 = vmul.f32 -1.442695, %v1865_v6  ;;  %v837_v12 = vld [vmem:[#allocation12 + $0x278] sm:$0xff]  ;;  %v816_v15 = vld [vmem:[#allocation12 + $0x1d0] sm:$0xff] }
  0x51   : > { %742 = vmatpush.msra.mxu1 %v717_v43  ;;  %916 = vmatpush.msra.mxu3 %v779_v49  ;;  %v774_v8 = vld [vmem:[#allocation12 + $0x80] sm:$0xff]  ;;  %v853_v13 = vld [vmem:[#allocation12 + $0x2f8] sm:$0xff]  ;;  %v799_v16 = vld [vmem:[#allocation12 + $0x148] sm:$0xff] }
  0x52   : > { %707 = vmatpush.msra.mxu0 %v680_v46  ;;  %897 = vmatpush.msra.mxu2 %v762_v52  ;;  %1394 = vpow2.f32 %v1231_v9  ;;  %v836_v17 = vld [vmem:[#allocation12 + $0x270] sm:$0xff]  ;;  %v798_v19 = vld [vmem:[#allocation12 + $0x140] sm:$0xff]  ;;  %v815_v20 = vld [vmem:[#allocation12 + $0x1c8] sm:$0xff] }
  0x53   : > { %743 = vmatpush.msra.mxu1 %v716_v47  ;;  %917 = vmatpush.msra.mxu3 %v778_v53  ;;  %v852_v18 = vld [vmem:[#allocation12 + $0x2f0] sm:$0xff]  ;;  %v814_v21 = vld [vmem:[#allocation12 + $0x1c0] sm:$0xff]  ;;  %v835_v22 = vld [vmem:[#allocation12 + $0x268] sm:$0xff] }
  0x54   : > { %708 = vmatpush.msra.mxu0 %v679_v50  ;;  %898 = vmatpush.msra.mxu2 %v761_v58  ;;  %v851_v23 = vld [vmem:[#allocation12 + $0x2e8] sm:$0xff]  ;;  %v1352_v24 = vld [vmem:[#allocation6] ss:$0 sm:$0xff]  ;;  %v797_v25 = vld [vmem:[#allocation12 + $0x138] sm:$0xff] }
  0x55   : > { %744 = vmatpush.msra.mxu1 %v715_v51  ;;  %918 = vmatpush.msra.mxu3 %v777_v59  ;;  %v813_v26 = vld [vmem:[#allocation12 + $0x1b8] sm:$0xff]  ;;  %v834_v27 = vld [vmem:[#allocation12 + $0x260] sm:$0xff]  ;;  %v1353_v32 = vld [vmem:[#allocation6 + $0x1] ss:$0 sm:$0xff]  ;;  %vm428_vm0 = vcmp.ge.f32.partialorder %v1865_v6, %v1352_v24  ;;  %v1875_v45 = vsub.f32 %v1865_v6, %v1352_v24 }
  0x56   : > { %709 = vmatpush.msra.mxu0 %v678_v54  ;;  %899 = vmatpush.msra.mxu2 %v760_v62  ;;  %v850_v28 = vld [vmem:[#allocation12 + $0x2e0] sm:$0xff]  ;;  %v833_v30 = vld [vmem:[#allocation12 + $0x258] sm:$0xff]  ;;  %v796_v33 = vld [vmem:[#allocation12 + $0x130] sm:$0xff]  ;;  %v1219_v38 = vsel %vm428_vm0, 1.0, %v1681_v37  ;;  %vm431_vm1 = vcmp.ge.f32.partialorder %v1865_v6, %v1353_v32  ;;  %v1880_v51 = vsub.f32 %v1865_v6, %v1353_v32 }
  0x57   : > { %745 = vmatpush.msra.mxu1 %v714_v55  ;;  %919 = vmatpush.msra.mxu3 %v776_v63  ;;  %v849_v31 = vld [vmem:[#allocation12 + $0x2d8] sm:$0xff]  ;;  %v812_v34 = vld [vmem:[#allocation12 + $0x1b0] sm:$0xff]  ;;  %v795_v40 = vld [vmem:[#allocation12 + $0x128] sm:$0xff]  ;;  %v1220_v46 = vsel %vm431_vm1, 1.0, %v1681_v37 }
  0x58   : > { %926 = vmatpush.msrb.mxu0 %v805_v56  ;;  %900 = vmatpush.msra.mxu2 %v759_v2  ;;  %v1395_v29 = vpop.eup %1394  ;;  %v1354_v36 = vld [vmem:[#allocation6 + $0x2] ss:$0 sm:$0xff]  ;;  %v1355_v39 = vld [vmem:[#allocation6 + $0x3] ss:$0 sm:$0xff]  ;;  %v811_v41 = vld [vmem:[#allocation12 + $0x1a8] sm:$0xff]  ;;  %v434_v53 = vsub.f32 %v1219_v38, %v1220_v46 }
  0x59   : > { %946 = vmatpush.msrb.mxu1 %v821_v57  ;;  %920 = vmatpush.msra.mxu3 %v775_v3  ;;  %v1869_v35 = vadd.f32 1.0, %v1395_v29  ;;  %v832_v42 = vld [vmem:[#allocation12 + $0x250] sm:$0xff]  ;;  %v831_v44 = vld [vmem:[#allocation12 + $0x248] sm:$0xff]  ;;  %vm435_vm2 = vcmp.ge.f32.partialorder %v1865_v6, %v1354_v36  ;;  %v1357_v47 = vld [vmem:[#allocation8] ss:$0 sm:$0xff]  ;;  %v1883_v52 = vsub.f32 %v1865_v6, %v1354_v36  ;;  %v1886_v56 = vsub.f32 %v1865_v6, %v1355_v39 }
  0x5a   : > { %927 = vmatpush.msrb.mxu0 %v804_v60  ;;  %901 = vmatpush.msra.mxu2 %v758_v7  ;;  %v1356_v43 = vld [vmem:[#allocation6 + $0x4] ss:$0 sm:$0xff]  ;;  %v794_v48 = vld [vmem:[#allocation12 + $0x120] sm:$0xff]  ;;  %v1221_v57 = vsel %vm435_vm2, 1.0, %v1681_v37  ;;  %vm439_vm3 = vcmp.ge.f32.partialorder %v1865_v6, %v1355_v39  ;;  %v793_v59 = vld [vmem:[#allocation12 + $0x118] sm:$0xff] }
  0x5b   : > { %947 = vmatpush.msrb.mxu1 %v820_v61  ;;  %921 = vmatpush.msra.mxu3 %v774_v8  ;;  %1396 = vrcp.f32 %v1869_v35  ;;  %v810_v49 = vld [vmem:[#allocation12 + $0x1a0] sm:$0xff]  ;;  %v848_v50 = vld [vmem:[#allocation12 + $0x2d0] sm:$0xff]  ;;  %vm443_vm4 = vcmp.ge.f32.partialorder %v1865_v6, %v1356_v43  ;;  %v809_v60 = vld [vmem:[#allocation12 + $0x198] sm:$0xff]  ;;  %v438_v61 = vsub.f32 %v1220_v46, %v1221_v57  ;;  %v1222_v62 = vsel %vm439_vm3, 1.0, %v1681_v37 }
  0x5c   : > { %928 = vmatpush.msrb.mxu0 %v803_v0  ;;  %966 = vmatpush.msrb.mxu2 %v837_v12  ;;  %v1358_v54 = vld [vmem:[#allocation8 + $0x1] ss:$0 sm:$0xff]  ;;  %v1359_v58 = vld [vmem:[#allocation8 + $0x2] ss:$0 sm:$0xff]  ;;  %v1894_v63 = vsel %vm443_vm4, 1.0, %v1681_v37  ;;  %v477_v0 = vmul.f32 %v1357_v47, %v434_v53  ;;  %v847_v2 = vld [vmem:[#allocation12 + $0x2c8] sm:$0xff]  ;;  %v1897_v3 = vsub.f32 %v1865_v6, %v1356_v43  ;;  %vm667_vm5 = vweird.f32 %v1869_v35 }
  0x5d   : > { %948 = vmatpush.msrb.mxu1 %v819_v1  ;;  %986 = vmatpush.msrb.mxu3 %v853_v13  ;;  %v830_v55 = vld [vmem:[#allocation12 + $0x240] sm:$0xff]  ;;  %v792_v8 = vld [vmem:[#allocation12 + $0x110] sm:$0xff]  ;;  %v480_v13 = vmul.f32 %v1358_v54, %v438_v61  ;;  %v1361_v24 = vld [vmem:[#allocation8 + $0xb] ss:$0 sm:$0xff] }
  0x5e   : > { %929 = vmatpush.msrb.mxu0 %v802_v4  ;;  %967 = vmatpush.msrb.mxu2 %v836_v17  ;;  %v1360_v1 = vld [vmem:[#allocation8 + $0x3] ss:$0 sm:$0xff]  ;;  %v442_v4 = vsub.f32 %v1221_v57, %v1222_v62  ;;  %v808_v9 = vld [vmem:[#allocation12 + $0x190] sm:$0xff]  ;;  %v827_v39 = vld [vmem:[#allocation12 + $0x228] sm:$0xff] }
  0x5f   : > { %949 = vmatpush.msrb.mxu1 %v818_v5  ;;  %987 = vmatpush.msrb.mxu3 %v852_v18  ;;  %v446_v5 = vsub.f32 %v1222_v62, %v1894_v63  ;;  %v846_v12 = vld [vmem:[#allocation12 + $0x2c0] sm:$0xff]  ;;  %v828_v17 = vld [vmem:[#allocation12 + $0x230] sm:$0xff]  ;;  %v885_v53 = vld [vmem:[#allocation12 + $0x3f8] sm:$0xff] }
  0x60   : > { %930 = vmatpush.msrb.mxu0 %v801_v10  ;;  %968 = vmatpush.msrb.mxu2 %v835_v22  ;;  %v671_v10 = vand.u32 2147483647, %v1869_v35  ;;  %v483_v18 = vmul.f32 %v1359_v58, %v442_v4  ;;  %v509_v22 = vmul.f32 %v480_v13, %v1883_v52  ;;  %v1366_v32 = vld [vmem:[#allocation6 + $0x5] ss:$0 sm:$0xff]  ;;  %v1367_v36 = vld [vmem:[#allocation6 + $0x6] ss:$0 sm:$0xff] }
  0x61   : > { %950 = vmatpush.msrb.mxu1 %v817_v11  ;;  %988 = vmatpush.msrb.mxu3 %v851_v23  ;;  %v1900_v7 = vpop.eup %1396  ;;  %v829_v11 = vld [vmem:[#allocation12 + $0x238] sm:$0xff]  ;;  %v511_v23 = vmul.f32 %v480_v13, %v1880_v51  ;;  %v806_v46 = vld [vmem:[#allocation12 + $0x180] sm:$0xff]  ;;  %v884_v54 = vld [vmem:[#allocation12 + $0x3f0] sm:$0xff]  ;;  %vm447_vm9 = vcmp.ge.f32.partialorder %v1865_v6, %v1366_v32  ;;  %vm451_vm10 = vcmp.ge.f32.partialorder %v1865_v6, %v1367_v36 }
  0x62   : > { %931 = vmatpush.msrb.mxu0 %v800_v14  ;;  %969 = vmatpush.msrb.mxu2 %v834_v27  ;;  %v508_v14 = vmul.f32 %v477_v0, %v1875_v45  ;;  %vm668_vm6 = vweird.f32 %v1900_v7  ;;  %v512_v29 = vmul.f32 %v483_v18, %v1886_v56  ;;  %vm1930_vm8 = vcmp.eq.f32.partialorder %v671_v10, 8.507059e+37  ;;  %v825_v61 = vld [vmem:[#allocation12 + $0x218] sm:$0xff]  ;;  %v1368_v62 = vld [vmem:[#allocation8 + $0x4] ss:$0 sm:$0xff] }
  0x63   : > { %951 = vmatpush.msrb.mxu1 %v816_v15  ;;  %989 = vmatpush.msrb.mxu3 %v850_v28  ;;  %v663_v15 = vmul.f32 %v1900_v7, %v1869_v35  ;;  %v845_v28 = vld [vmem:[#allocation12 + $0x2b8] sm:$0xff]  ;;  %vm1919_vm7 = vmor %vm667_vm5, %vm668_vm6  ;;  %v842_v10 = vld [vmem:[#allocation12 + $0x2a0] sm:$0xff] }
  0x64   : > { %932 = vmatpush.msrb.mxu0 %v799_v16  ;;  %970 = vmatpush.msrb.mxu2 %v833_v30  ;;  %v673_v16 = vand.u32 2147483648, %v1869_v35  ;;  %v514_v30 = vmul.f32 %v483_v18, %v1883_v52  ;;  %v868_v18 = vld [vmem:[#allocation12 + $0x370] sm:$0xff] }
  0x65   : > { %952 = vmatpush.msrb.mxu1 %v815_v20  ;;  %990 = vmatpush.msrb.mxu3 %v849_v31  ;;  %v791_v20 = vld [vmem:[#allocation12 + $0x108] sm:$0xff]  ;;  %v664_v27 = vsub.f32 1.0, %v663_v15  ;;  %v824_v15 = vld [vmem:[#allocation12 + $0x210] sm:$0xff] }
  0x66   : > { %933 = vmatpush.msrb.mxu0 %v798_v19  ;;  %971 = vmatpush.msrb.mxu2 %v832_v42  ;;  %v486_v19 = vmul.f32 %v1360_v1, %v446_v5  ;;  %v869_v1 = vld [vmem:[#allocation12 + $0x378] sm:$0xff] }
  0x67   : > { %953 = vmatpush.msrb.mxu1 %v814_v21  ;;  %991 = vmatpush.msrb.mxu3 %v848_v50  ;;  %v807_v21 = vld [vmem:[#allocation12 + $0x188] sm:$0xff]  ;;  %v665_v38 = vmul.f32 %v1900_v7, %v664_v27  ;;  %v841_v27 = vld [vmem:[#allocation12 + $0x298] sm:$0xff] }
  0x68   : > { %934 = vmatpush.msrb.mxu0 %v797_v25  ;;  %746 = vmatmul.f32.vlgmr.msra.gmra.mxu1 %v1865_v6  ;;  %v1362_v25 = vld [vmem:[#allocation8 + $0xc] ss:$0 sm:$0xff]  ;;  %v515_v31 = vmul.f32 %v486_v19, %v1897_v3 }
  0x69   : > { %954 = vmatpush.msrb.mxu1 %v813_v26  ;;  %972 = vmatpush.msrb.mxu2 %v831_v44  ;;  %v1363_v26 = vld [vmem:[#allocation8 + $0xd] ss:$0 sm:$0xff]  ;;  %v674_v44 = vor.u32 1.1754944e-38, %v673_v16  ;;  %v666_v50 = vadd.f32 %v1900_v7, %v665_v38  ;;  %v1371_v16 = vld [vmem:[#allocation6 + $0x7] ss:$0 sm:$0xff] }
  0x6a   : > { %935 = vmatpush.msrb.mxu0 %v796_v33  ;;  %992 = vmatpush.msrb.mxu3 %v847_v2  ;;  %v790_v33 = vld [vmem:[#allocation12 + $0x100] sm:$0xff]  ;;  %v516_v42 = vsub.f32 %v514_v30, %v515_v31  ;;  %v883_v2 = vld [vmem:[#allocation12 + $0x3e8] sm:$0xff]  ;;  %v1958_v31 = vsub.f32 %v1865_v6, %v1371_v16  ;;  %vm455_vm11 = vcmp.ge.f32.partialorder %v1865_v6, %v1371_v16  ;;  %v840_v38 = vld [vmem:[#allocation12 + $0x290] sm:$0xff] }
  0x6b   : > { %955 = vmatpush.msrb.mxu1 %v812_v34  ;;  %973 = vmatpush.msrb.mxu2 %v830_v55  ;;  %v510_v34 = vsub.f32 %v508_v14, %v509_v22  ;;  %v826_v55 = vld [vmem:[#allocation12 + $0x220] sm:$0xff]  ;;  %v670_v0 = vsel %vm1919_vm7, %v1900_v7, %v666_v50  ;;  %v1225_v14 = vsel %vm451_vm10, 1.0, %v1681_v37 }
  0x6c   : > { %936 = vmatpush.msrb.mxu0 %v795_v40  ;;  %993 = vmatpush.msrb.mxu3 %v846_v12  ;;  %v844_v40 = vld [vmem:[#allocation12 + $0x2b0] sm:$0xff]  ;;  %v546_v58 = vmul.f32 %v1363_v26, %v516_v42  ;;  %v675_v12 = vsel %vm1930_vm8, %v674_v44, %v670_v0 }
  0x6d   : > { %956 = vmatpush.msrb.mxu1 %v811_v41  ;;  %974 = vmatpush.msrb.mxu2 %v829_v11  ;;  %v513_v41 = vsub.f32 %v511_v23, %v512_v29  ;;  %v540_v47 = vmul.f32 %v1361_v24, %v510_v34  ;;  %v1224_v11 = vsel %vm447_vm9, 1.0, %v1681_v37  ;;  %v1372_v23 = vld [vmem:[#allocation6 + $0x8] ss:$0 sm:$0xff]  ;;  %v867_v29 = vld [vmem:[#allocation12 + $0x368] sm:$0xff] }
  0x6e   : > { %937 = vmatpush.msrb.mxu0 %v794_v48  ;;  %994 = vmatpush.msrb.mxu3 %v845_v28  ;;  %v1924_v48 = vsub.f32 %v1865_v6, %v1366_v32  ;;  %v572_v13 = vmul.f32 %v546_v58, %v1897_v3  ;;  %v450_v7 = vsub.f32 %v1894_v63, %v1224_v11  ;;  %v1373_v28 = vld [vmem:[#allocation8 + $0x5] ss:$0 sm:$0xff]  ;;  %v1374_v32 = vld [vmem:[#allocation8 + $0x6] ss:$0 sm:$0xff] }
  0x6f   : > { %957 = vmatpush.msrb.mxu1 %v810_v49  ;;  %975 = vmatpush.msrb.mxu2 %v828_v17  ;;  %v1927_v49 = vmul.f32 %v486_v19, %v1886_v56  ;;  %v543_v57 = vmul.f32 %v1362_v25, %v513_v41  ;;  %v677_v17 = vmul.f32 %v675_v12, %v1865_v6  ;;  %v882_v19 = vld [vmem:[#allocation12 + $0x3e0] sm:$0xff]  ;;  %v1369_v25 = vld [vmem:[#allocation8 + $0xe] ss:$0 sm:$0xff]  ;;  %v881_v41 = vld [vmem:[#allocation12 + $0x3d8] sm:$0xff] }
  0x70   : > { %938 = vmatpush.msrb.mxu0 %v793_v59  ;;  %995 = vmatpush.msrb.mxu3 %v844_v40  ;;  %v843_v59 = vld [vmem:[#allocation12 + $0x2a8] sm:$0xff]  ;;  %v454_v22 = vsub.f32 %v1224_v11, %v1225_v14  ;;  %v489_v63 = vmul.f32 %v1368_v62, %v450_v7  ;;  %v1955_v26 = vmul.f32 %v546_v58, %v1883_v52  ;;  %v866_v40 = vld [vmem:[#allocation12 + $0x360] sm:$0xff] }
  0x71   : > { %958 = vmatpush.msrb.mxu1 %v809_v60  ;;  %976 = vmatpush.msrb.mxu2 %v827_v39  ;;  %v568_v60 = vmul.f32 %v540_v47, %v1875_v45  ;;  %v569_v4 = vmul.f32 %v543_v57, %v1886_v56  ;;  %v571_v5 = vmul.f32 %v543_v57, %v1880_v51  ;;  %v1226_v39 = vsel %vm455_vm11, 1.0, %v1681_v37  ;;  %v1375_v47 = vld [vmem:[#allocation8 + $0x7] ss:$0 sm:$0xff]  ;;  %v880_v57 = vld [vmem:[#allocation12 + $0x3d0] sm:$0xff]  ;;  %v879_v12 = vld [vmem:[#allocation12 + $0x3c8] sm:$0xff] }
  0x72   : > { %939 = vmatpush.msrb.mxu0 %v792_v8  ;;  %v1364_v8 = vld [vmem:[#allocation8 + $0x15] ss:$0 sm:$0xff]  ;;  %996 = vmatpush.msrb.mxu3 %v843_v59  ;;  %v518_v34 = vmul.f32 %v489_v63, %v1924_v48  ;;  %vm459_vm12 = vcmp.ge.f32.partialorder %v1865_v6, %v1372_v23  ;;  %v458_v43 = vsub.f32 %v1225_v14, %v1226_v39 }
  0x73   : > { %959 = vmatpush.msrb.mxu1 %v808_v9  ;;  %v1365_v9 = vld [vmem:[#allocation8 + $0x16] ss:$0 sm:$0xff]  ;;  %977 = vmatpush.msrb.mxu2 %v826_v55  ;;  %v573_v24 = vsub.f32 %v571_v5, %v572_v13  ;;  %v1966_v44 = vsel %vm459_vm12, 1.0, %v1681_v37  ;;  %v1971_v55 = vsub.f32 %v1865_v6, %v1372_v23 }
  0x74   : > { %940 = vmatpush.msrb.mxu0 %v791_v20  ;;  %v570_v20 = vsub.f32 %v568_v60, %v569_v4  ;;  %997 = vmatpush.msrb.mxu3 %v842_v10  ;;  %v519_v35 = vsub.f32 %v1927_v49, %v518_v34  ;;  %v462_v58 = vsub.f32 %v1226_v39, %v1966_v44  ;;  %v1370_v49 = vld [vmem:[#allocation8 + $0x17] ss:$0 sm:$0xff]  ;;  %v1382_v10 = vld [vmem:[#allocation6 + $0x9] ss:$0 sm:$0xff]  ;;  %v1381_v34 = vld [vmem:[#allocation8 + $0x18] ss:$0 sm:$0xff] }
  0x75   : > { %960 = vmatpush.msrb.mxu1 %v807_v21  ;;  %v1952_v21 = vsub.f32 %v1865_v6, %v1367_v36  ;;  %978 = vmatpush.msrb.mxu2 %v825_v61  ;;  %v823_v36 = vld [vmem:[#allocation12 + $0x208] sm:$0xff]  ;;  %v495_v59 = vmul.f32 %v1374_v32, %v458_v43  ;;  %v520_v60 = vmul.f32 %v489_v63, %v1897_v3  ;;  %v864_v14 = vld [vmem:[#allocation12 + $0x350] sm:$0xff]  ;;  %v1386_v43 = vld [vmem:[#allocation6 + $0xa] ss:$0 sm:$0xff] }
  0x76   : > { %941 = vmatpush.msrb.mxu0 %v790_v33  ;;  %v597_v30 = vmul.f32 %v1364_v8, %v570_v20  ;;  %v600_v33 = vmul.f32 %v1365_v9, %v573_v24  ;;  %998 = vmatpush.msrb.mxu3 %v841_v27  ;;  %v1376_v61 = vld [vmem:[#allocation8 + $0xf] ss:$0 sm:$0xff]  ;;  %v549_v0 = vmul.f32 %v1369_v25, %v519_v35  ;;  %v1377_v9 = vld [vmem:[#allocation8 + $0x10] ss:$0 sm:$0xff]  ;;  %v878_v20 = vld [vmem:[#allocation12 + $0x3c0] sm:$0xff] }
  0x77   : > { %961 = vmatpush.msrb.mxu1 %v806_v46  ;;  %710 = vmatmul.f32.vlgmr.msra.gmra.mxu0 %v677_v17  ;;  %v492_v46 = vmul.f32 %v1373_v28, %v454_v22  ;;  %v498_v4 = vmul.f32 %v1375_v47, %v462_v58  ;;  %v524_v8 = vmul.f32 %v495_v59, %v1958_v31  ;;  %v1383_v24 = vld [vmem:[#allocation8 + $0x8] ss:$0 sm:$0xff]  ;;  %v862_v25 = vld [vmem:[#allocation12 + $0x340] sm:$0xff]  ;;  %v876_v47 = vld [vmem:[#allocation12 + $0x3b0] sm:$0xff] }
  0x78   : > { %1006 = vmatpush.msra.mxu0 %v869_v1  ;;  %v622_v42 = vmul.f32 %v597_v30, %v1875_v45  ;;  %979 = vmatpush.msrb.mxu2 %v824_v15  ;;  %v623_v50 = vmul.f32 %v600_v33, %v1897_v3  ;;  %v865_v45 = vld [vmem:[#allocation12 + $0x358] sm:$0xff]  ;;  %v575_v11 = vmul.f32 %v549_v0, %v1924_v48  ;;  %v863_v63 = vld [vmem:[#allocation12 + $0x348] sm:$0xff]  ;;  %v1384_v58 = vld [vmem:[#allocation8 + $0x12] ss:$0 sm:$0xff] }
  0x79   : > { %1026 = vmatpush.msra.mxu1 %v885_v53  ;;  %v822_v53 = vld [vmem:[#allocation12 + $0x200] sm:$0xff]  ;;  %999 = vmatpush.msrb.mxu3 %v840_v38  ;;  %v521_v1 = vmul.f32 %v492_v46, %v1952_v21  ;;  %v523_v5 = vmul.f32 %v492_v46, %v1924_v48  ;;  %v526_v7 = vmul.f32 %v495_v59, %v1952_v21  ;;  %v877_v30 = vld [vmem:[#allocation12 + $0x3b8] sm:$0xff] }
  0x7a   : > { %1007 = vmatpush.msra.mxu0 %v868_v18  ;;  %980 = vmatpush.msrb.mxu2 %v823_v36  ;;  %v624_v62 = vsub.f32 %v622_v42, %v623_v50  ;;  %v625_v15 = vmul.f32 %v600_v33, %v1880_v51  ;;  %v527_v17 = vmul.f32 %v498_v4, %v1971_v55  ;;  %v1378_v18 = vld [vmem:[#allocation8 + $0x11] ss:$0 sm:$0xff]  ;;  %v861_v38 = vld [vmem:[#allocation12 + $0x338] sm:$0xff] }
  0x7b   : > { %1027 = vmatpush.msra.mxu1 %v884_v54  ;;  %v839_v54 = vld [vmem:[#allocation12 + $0x288] sm:$0xff]  ;;  %v522_v13 = vsub.f32 %v520_v60, %v521_v1  ;;  %v525_v16 = vsub.f32 %v523_v5, %v524_v8  ;;  %v577_v23 = vmul.f32 %v549_v0, %v1886_v56  ;;  %vm463_vm13 = vcmp.ge.f32.partialorder %v1865_v6, %v1382_v10  ;;  %v1379_v42 = vld [vmem:[#allocation8 + $0x19] ss:$0 sm:$0xff]  ;;  %v1390_v0 = vld [vmem:[#allocation6 + $0xb] ss:$0 sm:$0xff] }
  0x7c   : > { %1008 = vmatpush.msra.mxu0 %v867_v29  ;;  %981 = vmatpush.msrb.mxu2 %v822_v53  ;;  %v528_v27 = vsub.f32 %v526_v7, %v527_v17  ;;  %v1986_v28 = vsub.f32 %v1865_v6, %v1382_v10  ;;  %v1989_v29 = vsel %vm463_vm13, 1.0, %v1681_v37  ;;  %v529_v53 = vmul.f32 %v498_v4, %v1958_v31  ;;  %v859_v7 = vld [vmem:[#allocation12 + $0x328] sm:$0xff] }
  0x7d   : > { %1028 = vmatpush.msra.mxu1 %v883_v2  ;;  %v838_v2 = vld [vmem:[#allocation12 + $0x280] sm:$0xff]  ;;  %1000 = vmatpush.msrb.mxu3 %v839_v54  ;;  %v552_v22 = vmul.f32 %v1376_v61, %v522_v13  ;;  %v555_v51 = vmul.f32 %v1377_v9, %v525_v16  ;;  %v466_v36 = vsub.f32 %v1966_v44, %v1989_v29 }
  0x7e   : > { %1009 = vmatpush.msra.mxu0 %v866_v40  ;;  %902 = vmatmul.f32.vlgmr.msra.gmra.mxu2 %v624_v62  ;;  %v558_v39 = vmul.f32 %v1378_v18, %v528_v27  ;;  %v875_v62 = vld [vmem:[#allocation12 + $0x3a8] sm:$0xff]  ;;  %vm467_vm14 = vcmp.ge.f32.partialorder %v1865_v6, %v1386_v43  ;;  %v2004_v4 = vsub.f32 %v1865_v6, %v1386_v43 }
  0x7f   : > { %1029 = vmatpush.msra.mxu1 %v882_v19  ;;  %1001 = vmatpush.msrb.mxu3 %v838_v2  ;;  %v576_v19 = vsub.f32 %v1955_v26, %v575_v11  ;;  %v580_v32 = vmul.f32 %v552_v22, %v1897_v3  ;;  %v578_v33 = vmul.f32 %v552_v22, %v1952_v21  ;;  %v1229_v5 = vsel %vm467_vm14, 1.0, %v1681_v37  ;;  %v874_v11 = vld [vmem:[#allocation12 + $0x3a0] sm:$0xff]  ;;  %v873_v22 = vld [vmem:[#allocation12 + $0x398] sm:$0xff]  ;;  %v855_v43 = vld [vmem:[#allocation12 + $0x308] sm:$0xff] }
  0x80   : > { %1010 = vmatpush.msra.mxu0 %v865_v45  ;;  %v581_v40 = vmul.f32 %v555_v51, %v1958_v31  ;;  %v501_v35 = vmul.f32 %v1383_v24, %v466_v36  ;;  %v584_v44 = vmul.f32 %v558_v39, %v1971_v55  ;;  %v1380_v45 = vld [vmem:[#allocation8 + $0x1a] ss:$0 sm:$0xff]  ;;  %v586_v18 = vmul.f32 %v558_v39, %v1952_v21  ;;  %v1391_v24 = vld [vmem:[#allocation8 + $0xa] ss:$0 sm:$0xff] }
  0x81   : > { %1030 = vmatpush.msra.mxu1 %v881_v41  ;;  %v603_v26 = vmul.f32 %v1370_v49, %v576_v19  ;;  %v583_v41 = vmul.f32 %v555_v51, %v1924_v48  ;;  %v579_v50 = vsub.f32 %v577_v23, %v578_v33  ;;  %v860_v49 = vld [vmem:[#allocation12 + $0x330] sm:$0xff]  ;;  %vm471_vm15 = vcmp.ge.f32.partialorder %v1865_v6, %v1390_v0  ;;  %v871_v39 = vld [vmem:[#allocation12 + $0x388] sm:$0xff] }
  0x82   : > { %1011 = vmatpush.msra.mxu0 %v864_v14  ;;  %v582_v54 = vsub.f32 %v580_v32, %v581_v40  ;;  %v530_v61 = vmul.f32 %v501_v35, %v1986_v28  ;;  %v532_v23 = vmul.f32 %v501_v35, %v1971_v55  ;;  %v427_v27 = vsub.f32 %v1865_v6, %v1390_v0  ;;  %v1388_v33 = vld [vmem:[#allocation8 + $0x13] ss:$0 sm:$0xff] }
  0x83   : > { %1031 = vmatpush.msra.mxu1 %v880_v57  ;;  %v626_v46 = vmul.f32 %v603_v26, %v1924_v48  ;;  %v628_v57 = vmul.f32 %v603_v26, %v1883_v52  ;;  %v606_v60 = vmul.f32 %v1381_v34, %v579_v50  ;;  %v585_v1 = vsub.f32 %v583_v41, %v584_v44  ;;  %v1387_v52 = vld [vmem:[#allocation8 + $0x9] ss:$0 sm:$0xff]  ;;  %v857_v26 = vld [vmem:[#allocation12 + $0x318] sm:$0xff]  ;;  %v870_v50 = vld [vmem:[#allocation12 + $0x380] sm:$0xff] }
  0x84   : > { %1012 = vmatpush.msra.mxu0 %v863_v63  ;;  %v609_v2 = vmul.f32 %v1379_v42, %v582_v54  ;;  %v531_v9 = vsub.f32 %v529_v53, %v530_v61  ;;  %v1230_v51 = vsel %vm471_vm15, 1.0, %v1681_v37  ;;  %v1392_v53 = vld [vmem:[#allocation8 + $0x14] ss:$0 sm:$0xff]  ;;  %v854_v44 = vld [vmem:[#allocation12 + $0x300] sm:$0xff] }
  0x85   : > { %1032 = vmatpush.msra.mxu1 %v879_v12  ;;  %v627_v59 = vsub.f32 %v625_v15, %v626_v46  ;;  %v629_v8 = vmul.f32 %v606_v60, %v1952_v21  ;;  %v631_v10 = vmul.f32 %v606_v60, %v1886_v56  ;;  %v612_v12 = vmul.f32 %v1380_v45, %v585_v1  ;;  %v858_v56 = vld [vmem:[#allocation12 + $0x320] sm:$0xff] }
  0x86   : > { %1013 = vmatpush.msra.mxu0 %v862_v25  ;;  %v634_v13 = vmul.f32 %v609_v2, %v1897_v3  ;;  %v632_v14 = vmul.f32 %v609_v2, %v1958_v31  ;;  %v470_v15 = vsub.f32 %v1989_v29, %v1229_v5  ;;  %v561_v17 = vmul.f32 %v1384_v58, %v531_v9  ;;  %v1385_v25 = vld [vmem:[#allocation8 + $0x1b] ss:$0 sm:$0xff] }
  0x87   : > { %1033 = vmatpush.msra.mxu1 %v878_v20  ;;  %922 = vmatmul.f32.vlgmr.msra.gmra.mxu3 %v627_v59  ;;  %v630_v16 = vsub.f32 %v628_v57, %v629_v8  ;;  %v635_v19 = vmul.f32 %v612_v12, %v1971_v55  ;;  %v474_v34 = vsub.f32 %v1229_v5, %v1230_v51  ;;  %v1389_v57 = vld [vmem:[#allocation8 + $0x1c] ss:$0 sm:$0xff] }
  0x88   : > { %1014 = vmatpush.msra.mxu0 %v861_v38  ;;  %v633_v20 = vsub.f32 %v631_v10, %v632_v14  ;;  %v504_v3 = vmul.f32 %v1387_v52, %v470_v15  ;;  %v587_v63 = vmul.f32 %v561_v17, %v1986_v28  ;;  %v856_v38 = vld [vmem:[#allocation12 + $0x310] sm:$0xff]  ;;  %v637_v42 = vmul.f32 %v612_v12, %v1924_v48 }
  0x89   : > { %1034 = vmatpush.msra.mxu1 %v877_v30  ;;  %v636_v29 = vsub.f32 %v634_v13, %v635_v19  ;;  %942 = vmatmul.f32.vlgmr.msrb.gmra.mxu0 %v630_v16  ;;  %v872_v30 = vld [vmem:[#allocation12 + $0x390] sm:$0xff]  ;;  %v507_v41 = vmul.f32 %v1391_v24, %v474_v34 }
  0x8a   : > { %1015 = vmatpush.msra.mxu0 %v860_v49  ;;  %962 = vmatmul.f32.vlgmr.msrb.gmra.mxu1 %v633_v20  ;;  %v533_v32 = vmul.f32 %v504_v3, %v2004_v4  ;;  %v588_v36 = vsub.f32 %v586_v18, %v587_v63  ;;  %v535_v6 = vmul.f32 %v504_v3, %v1986_v28  ;;  %v1393_v49 = vld [vmem:[#allocation8 + $0x1d] ss:$0 sm:$0xff] }
  0x8b   : > { %1035 = vmatpush.msra.mxu1 %v876_v47  ;;  %982 = vmatmul.f32.vlgmr.msrb.gmra.mxu2 %v636_v29  ;;  %v589_v47 = vmul.f32 %v561_v17, %v1958_v31  ;;  %v536_v35 = vmul.f32 %v507_v41, %v427_v27 }
  0x8c   : > { %1016 = vmatpush.msra.mxu0 %v859_v7  ;;  %v534_v40 = vsub.f32 %v532_v23, %v533_v32  ;;  %v615_v37 = vmul.f32 %v1385_v25, %v588_v36 }
  0x8d   : > { %1036 = vmatpush.msra.mxu1 %v875_v62  ;;  %v537_v58 = vsub.f32 %v535_v6, %v536_v35 }
  0x8e   : > { %1017 = vmatpush.msra.mxu0 %v858_v56  ;;  %v564_v46 = vmul.f32 %v1388_v33, %v534_v40  ;;  %v638_v54 = vmul.f32 %v615_v37, %v1986_v28  ;;  %v640_v0 = vmul.f32 %v615_v37, %v1952_v21 }
  0x8f   : > { %1037 = vmatpush.msra.mxu1 %v874_v11  ;;  %v567_v60 = vmul.f32 %v1392_v53, %v537_v58 }
  0x90   : > { %1018 = vmatpush.msra.mxu0 %v857_v26  ;;  %v590_v45 = vmul.f32 %v564_v46, %v2004_v4  ;;  %v639_v59 = vsub.f32 %v637_v42, %v638_v54  ;;  %v592_v61 = vmul.f32 %v564_v46, %v1971_v55 }
  0x91   : > { %1038 = vmatpush.msra.mxu1 %v873_v22  ;;  %v593_v28 = vmul.f32 %v567_v60, %v427_v27 }
  0x92   : > { %1019 = vmatpush.msra.mxu0 %v856_v38  ;;  %v591_v48 = vsub.f32 %v589_v47, %v590_v45  ;;  %1002 = vmatmul.f32.vlgmr.msrb.gmra.mxu3 %v639_v59 }
  0x93   : > { %1039 = vmatpush.msra.mxu1 %v872_v30  ;;  %v594_v2 = vsub.f32 %v592_v61, %v593_v28 }
  0x94   : > { %1020 = vmatpush.msra.mxu0 %v855_v43  ;;  %v618_v62 = vmul.f32 %v1389_v57, %v591_v48 }
  0x95   : > { %1040 = vmatpush.msra.mxu1 %v871_v39  ;;  %v621_v52 = vmul.f32 %v1393_v49, %v594_v2 }
  0x96   : > { %1021 = vmatpush.msra.mxu0 %v854_v44  ;;  %v641_v1 = vmul.f32 %v618_v62, %v2004_v4  ;;  %v643_v8 = vmul.f32 %v618_v62, %v1958_v31 }
  0x97   : > { %1041 = vmatpush.msra.mxu1 %v870_v50  ;;  %v644_v9 = vmul.f32 %v621_v52, %v427_v27 }
  0x98   : > { %v642_v5 = vsub.f32 %v640_v0, %v641_v1 }
  0x99   : > { %v645_v10 = vsub.f32 %v643_v8, %v644_v9 }
  0x9a   : > { %1022 = vmatmul.f32.vlgmr.msra.gmra.mxu0 %v642_v5 }
  0x9b   : > { %1042 = vmatmul.f32.vlgmr.msra.gmra.mxu1 %v645_v10 }
  0xe5   : > { %v747_v11 = vpop.f32.mrf.mxu1 }
  0xf4   : > { %v711_v55 = vpop.f32.mrf.mxu0 }
  0xf5   : > { %v1047_v3 = vmul.f32 %v747_v11, %v711_v55 }
 0x101   : > { %v903_v12 = vpop.f32.mrf.mxu2 }
 0x106   : > { %v943_v21 = vpop.f32.mrf.mxu0 }
 0x107   : > { %v963_v15 = vpop.f32.mrf.mxu1 }
 0x10a   : > { %v923_v13 = vpop.f32.mrf.mxu3 }
 0x10b   : > { %v924_v7 = vadd.f32 %v923_v13, %v903_v12 }
 0x10d   : > { %v944_v14 = vadd.f32 %v943_v21, %v924_v7 }
 0x10e   : > { %v983_v16 = vpop.f32.mrf.mxu2 }
 0x10f   : > { %v964_v4 = vadd.f32 %v963_v15, %v944_v14 }
 0x111   : > { %v984_v17 = vadd.f32 %v983_v16, %v964_v4 }
 0x115   : > { %v1003_v18 = vpop.f32.mrf.mxu3 }
 0x116   : > { %v1004_v19 = vadd.f32 %v1003_v18, %v984_v17 }
 0x117   : > { %v1023_v31 = vpop.f32.mrf.mxu0 }
 0x118   : > { %v1024_v56 = vadd.f32 %v1023_v31, %v1004_v19  ;;  %v1043_v20 = vpop.f32.mrf.mxu1 }
 0x11a   : > { %v1044_v22 = vadd.f32 %v1043_v20, %v1024_v56 }
 0x11c   : > { %v1046_v23 = vadd.f32 %v1044_v22, %v711_v55 }
 0x11e   : > { %v1048_v24 = vadd.f32 %v1047_v3, %v1046_v23 }
 0x120   : > { %1049 = vst [vmem:[%s386_s14] sm:$0xff] %v1048_v24 }
 0x121   : > { %1605 = shalt.err (!%p1602_p13)
}
 0x122   : > { %1258 = dma.vmem_to_hbm [thread:$0]  (%p1818_p4), %s1065_s20, 128, %s1067_s27, %s1051_s30  }
 0x123 PF: > { %s1078_s1 = sand.u32 1, %s1652_s21   ;;  %p1281_p0 = pnand %p1208_p6, %p1826_p7 }
 0x124   : > { %s1079_s28 = scalar_lea.sflag [#allocation5], %s1078_s1 }
 0x125   : > { %p1282_p2 = pneg %p1281_p0 }
 0x127   : > { %1647 = dma.done.wait (%p1282_p2), %s1079_s28, 128  }
 0x128   : > { %1649 = vsyncadd (%p1282_p2), %s1079_s28, 4294967168  ;;  %s25_s26 = sadd.s32 1, %s1672_s26   ;;  %s2089_s21 = smov %s1656_s22 }
 0x129   : > { %p22_p5 = scmp.ge.s32.totalorder %s25_s26, 4   ;;  %s2090_s22 = smov %s1660_s23 }
 0x12a   : > { %s2091_s23 = smov %s1824_s7  ;;  %s2092_s24 = smov %s1668_s25 }
 0x12b   : > { %s2093_s25 = smov %s2095_s9  ;;  %24 = sbr.rel (!%p22_p5) target bundleno = 11 (0xb), region = 117 }
 0x130   :  { %1085 = vsyncpa [#allocation4], 1 }
 0x131   :  { %1087 = vsyncpa [#allocation4 + $0x1], 1 }
 0x132   :  { %1088 = vsyncpa [#allocation7], 1 }
 0x133   :  { %1089 = vsyncpa [#allocation10], 1 }
 0x134   :  { %1090 = vsyncpa [#allocation13], 1 }
 0x135   :  { %1091 = vsyncpa [#allocation5], 1 }
 0x136   :  { %1093 = vsyncpa [#allocation5 + $0x1], 1 }

</bundles_post_ra>
